<compile_context>
chip_gen: v6e
topology: v6e:2x2x1
jax: 0.10.0
libtpu: 0.0.40
codegen_flags: <defaults>
</compile_context>

<pallas_src>
import jax
import jax.numpy as jnp
import numpy as np
from jax.experimental import pallas as pl
from jax.experimental.pallas import tpu as pltpu


def gcn_spa_kernel(g_ref, x_ref, wy_ref, wx_ref, b_ref, o_ref, y_ref):
    """One grid step = B (n,t) slabs, resident on the 128-lane axis.

    g_ref : (V, V, B)        bf16, g_ref[u, v, j] = g[slab j, v, u]
    x_ref : (C_in*V, B)      bf16, row c*V + u    = x[slab j, u, c]
    wy_ref: (V*C_out, C_in*V) f32  kron weight, aggregated path (BN folded)
    wx_ref: (V*C_out, C_in*V) f32  kron weight, residual path   (BN folded)
    b_ref : (V*C_out, 1)     f32  fused conv-bias + BN shift
    o_ref : (V*C_out, B)     f32
    y_ref : (C_in*V, B)      f32  VMEM scratch holding the aggregated features
    """
    n_v = g_ref.shape[0]
    blk = o_ref.shape[-1]
    c_in = x_ref.shape[0] // n_v

    # --- stage 1: graph aggregation  y[v,c] = sum_u g[v,u] * x[u,c] ------------
    # V-unrolled VPU FMAs on lane-dense tiles (no MXU micro-matmuls).  Lane-
    # chunked to bound the live vreg working set regardless of the block size.
    chunk = min(blk, 256)
    for j0 in range(0, blk, chunk):
        width = min(chunk, blk - j0)
        lanes = slice(j0, j0 + width)
        acc = [jnp.zeros((n_v, width), jnp.float32) for _ in range(c_in)]
        for u in range(n_v):
            g_u = g_ref[u, :, lanes].astype(jnp.float32)                 # (V, width)
            for c in range(c_in):
                row = c * n_v + u
                x_cu = x_ref[row:row + 1, lanes].astype(jnp.float32)     # (1, width)
                acc[c] = acc[c] + x_cu * g_u                             # row-broadcast FMA
        for c in range(c_in):
            y_ref[c * n_v:(c + 1) * n_v, lanes] = acc[c]

    # --- stage 2: fused 1x1 convs + BN + ReLU (two resident kron matmuls) ------
    out = jnp.dot(wy_ref[...], y_ref[...], preferred_element_type=jnp.float32)
    out = out + jnp.dot(wx_ref[...], x_ref[...].astype(jnp.float32),
                        preferred_element_type=jnp.float32)
    out = out + b_ref[...]                          # (V*C_out, 1) broadcast over lanes
    o_ref[...] = jnp.maximum(out, 0.0)


def _round_up(x, m):
    return -(-x // m) * m


def _choose_lane_block(nt, v, c_in, c_out):
    """Slabs per grid step (they sit on the 128-lane axis).

    VMEM accounting uses (8,128)-tile-padded sizes (bf16 inputs, f32 output and
    scratch, double-buffered I/O blocks + resident weights).  Targets >= 8 grid
    steps when the problem allows (pipelining on both v7x TensorCores) and caps
    the block at 1024 lanes (per-chunk vreg working set / trace size).
    """
    if nt <= 128:
        return nt                                     # full-extent block is allowed

    def padded(rows, cols, elt):
        return _round_up(rows, 8) * _round_up(cols, 128) * elt

    def vmem_bytes(b):
        g_blk = v * padded(v, b, 2)                   # (V, V, B) bf16
        x_blk = padded(c_in * v, b, 2)                # (C_in*V, B) bf16
        o_blk = padded(c_out * v, b, 4)               # (C_out*V, B) f32
        y_scr = padded(c_in * v, b, 4)                # scratch (single-buffered)
        w_res = 2 * padded(c_out * v, c_in * v, 4) + padded(c_out * v, 1, 4)
        return 2 * (g_blk + x_blk + o_blk) + y_scr + w_res

    budget = 24 * 1024 * 1024                         # conservative on v5e/v6e/v7x
    b = 1024
    while b > 128 and (vmem_bytes(b) > budget or pl.cdiv(nt, b) < 8):
        b -= 128
    return b


def gcn_spa_forward(x1, g, w, w1, b1, gamma, beta, running_mean, running_var,
                    eps=1e-5, compute_dtype=jnp.bfloat16):
    N, C_in, V, T = x1.shape
    C_out = w.shape[0]
    NT = N * T

    # ---- layout: (n,t) slabs on the lane axis.  The layout transpose fuses with
    # ---- the bf16 cast, so it does not add an extra HBM pass.
    # g_t[u, v, nt] = g[n, t, v, u]
    g_t = jnp.transpose(g, (3, 2, 0, 1)).reshape(V, V, NT).astype(compute_dtype)
    # x_t[c*V + u, nt] = x1[n, c, u, t]
    x_t = jnp.transpose(x1, (1, 2, 0, 3)).reshape(C_in * V, NT).astype(compute_dtype)

    # ---- fold BN (inference form) + conv bias into block-diagonal kron weights.
    scale = gamma / jnp.sqrt(running_var + eps)                  # (C_out,)
    shift = beta - running_mean * scale
    wm = w.reshape(C_out, -1) * scale[:, None]                   # (C_out, C_in)
    w1m = w1.reshape(C_out, -1) * scale[:, None]
    eye_v = jnp.eye(V, dtype=jnp.float32)

    def kron_weight(m):          # rows v*C_out + o, cols c*V + v':  m[o,c] * delta(v, v')
        k4 = m[None, :, :, None] * eye_v[:, None, None, :]       # (V, C_out, C_in, V)
        return k4.reshape(V * C_out, C_in * V)

    wy = kron_weight(wm)                                          # aggregated path
    wx = kron_weight(w1m)                                         # residual path
    bias_col = jnp.tile(b1 * scale + shift, V).reshape(V * C_out, 1)

    B = _choose_lane_block(NT, V, C_in, C_out)
    grid = (pl.cdiv(NT, B),)                                      # partial tail block OK

    out_t = pl.pallas_call(
        gcn_spa_kernel,
        out_shape=jax.ShapeDtypeStruct((V * C_out, NT), jnp.float32),
        grid_spec=pltpu.PrefetchScalarGridSpec(
            num_scalar_prefetch=0,
            grid=grid,
            in_specs=[
                # TODO(synk): sweep pipeline_mode=pl.Buffered(3) on g/x if DMA stays exposed.
                pl.BlockSpec((V, V, B), lambda i: (0, 0, i)),             # g slabs
                pl.BlockSpec((C_in * V, B), lambda i: (0, i)),            # x slabs
                pl.BlockSpec((V * C_out, C_in * V), lambda i: (0, 0)),    # kron W   (resident)
                pl.BlockSpec((V * C_out, C_in * V), lambda i: (0, 0)),    # kron W1  (resident)
                pl.BlockSpec((V * C_out, 1), lambda i: (0, 0)),           # fused bias (resident)
            ],
            out_specs=pl.BlockSpec((V * C_out, B), lambda i: (0, i)),
            scratch_shapes=[pltpu.VMEM((C_in * V, B), jnp.float32)],
        ),
        compiler_params=pltpu.CompilerParams(
            dimension_semantics=("parallel",),
            vmem_limit_bytes=32 * 1024 * 1024,
        ),
    )(g_t, x_t, wy, wx, bias_col)

    # (V*C_out, NT) -> (N, C_out, V, T)
    out = out_t.reshape(V, C_out, N, T)
    return jnp.transpose(out, (2, 1, 0, 3))


def gcn_spa_ref(x1, g, w, w1, b1, gamma, beta, rm, rv, eps=1e-5):
    """Pure-JAX f32 reference mirroring the PyTorch forward (BN inference form)."""
    C_out = w.shape[0]
    x = jnp.transpose(x1, (0, 3, 2, 1))                           # (N, T, V, C_in)
    x = jnp.einsum('ntvu,ntuc->ntvc', g, x)                       # g.matmul(x)
    x = jnp.transpose(x, (0, 3, 2, 1))                            # (N, C_in, V, T)
    wm = w.reshape(C_out, -1)
    w1m = w1.reshape(C_out, -1)
    y = jnp.einsum('oc,ncvt->novt', wm, x)
    y = y + jnp.einsum('oc,ncvt->novt', w1m, x1) + b1[None, :, None, None]
    y = (y - rm[None, :, None, None]) / jnp.sqrt(rv[None, :, None, None] + eps)
    y = y * gamma[None, :, None, None] + beta[None, :, None, None]
    return jnp.maximum(y, 0.0)


if __name__ == "__main__":
    # Small synthetic shapes.
    N, C_in, C_out, V, T = 2, 4, 8, 16, 8

    key = jax.random.PRNGKey(0)
    k_x, k_g, k_w, k_w1 = jax.random.split(key, 4)

    x1 = jax.random.normal(k_x, (N, C_in, V, T), dtype=jnp.float32)
    # adjacency-like tensor (row-softmaxed, like SGN's compute_g1)
    g = jax.nn.softmax(jax.random.normal(k_g, (N, T, V, V), dtype=jnp.float32), axis=-1)

    bound = 1.0 / np.sqrt(C_in)
    w = jax.random.uniform(k_w, (C_out, C_in, 1, 1), jnp.float32, -bound, bound)
    w1 = jax.random.uniform(k_w1, (C_out, C_in, 1, 1), jnp.float32, -bound, bound)
    b1 = jnp.zeros((C_out,), jnp.float32)            # gcn_spa default: bias=False

    # BatchNorm2d params at init (inference form).
    gamma = jnp.ones((C_out,), jnp.float32)
    beta = jnp.zeros((C_out,), jnp.float32)
    running_mean = jnp.zeros((C_out,), jnp.float32)
    running_var = jnp.ones((C_out,), jnp.float32)

    out = gcn_spa_forward(x1, g, w, w1, b1, gamma, beta, running_mean, running_var)
    out = jax.block_until_ready(out)

    ref = gcn_spa_ref(x1, g, w, w1, b1, gamma, beta, running_mean, running_var)
    # bf16 inputs with f32 accumulation -> relaxed tolerance vs the f32 reference.
    np.testing.assert_allclose(np.asarray(out), np.asarray(ref), rtol=5e-2, atol=5e-2)

    print("KERNEL_OK")
</pallas_src>

<mosaic_0001>
module attributes {stable_mosaic.version = 11 : i64} {
  func.func @gcn_spa_kernel(%arg0: i32, %arg1: memref<16x16x16xbf16, #tpu.memory_space<vmem>>, %arg2: memref<64x16xbf16, #tpu.memory_space<vmem>>, %arg3: memref<128x64xf32, #tpu.memory_space<vmem>>, %arg4: memref<128x64xf32, #tpu.memory_space<vmem>>, %arg5: memref<128x1xf32, #tpu.memory_space<vmem>>, %arg6: memref<128x16xf32, #tpu.memory_space<vmem>>, %arg7: memref<64x16xf32, #tpu.memory_space<vmem>>) attributes {dimension_semantics = [#tpu.dimension_semantics<parallel>], iteration_bounds = array<i64: 1>, scalar_prefetch = 0 : i64, scratch_operands = 1 : i64, tpu.core_type = #tpu.core_type<tc>, window_params = [{transform_indices = @transform_0, window_bounds = array<i64: 16, 16, 16>}, {transform_indices = @transform_1, window_bounds = array<i64: 64, 16>}, {pipeline_mode = #tpu.pipeline_mode<synchronous>, transform_indices = @transform_2, window_bounds = array<i64: 128, 64>}, {pipeline_mode = #tpu.pipeline_mode<synchronous>, transform_indices = @transform_3, window_bounds = array<i64: 128, 64>}, {pipeline_mode = #tpu.pipeline_mode<synchronous>, transform_indices = @transform_4, window_bounds = array<i64: 128, 1>}, {transform_indices = @transform_5, window_bounds = array<i64: 128, 16>}]} {
    %cst = arith.constant 0.000000e+00 : f32
    %0 = vector.broadcast %cst : f32 to vector<16x16xf32>
    %cst_0 = arith.constant 0.000000e+00 : f32
    %1 = vector.broadcast %cst_0 : f32 to vector<16x16xf32>
    %cst_1 = arith.constant 0.000000e+00 : f32
    %2 = vector.broadcast %cst_1 : f32 to vector<16x16xf32>
    %cst_2 = arith.constant 0.000000e+00 : f32
    %3 = vector.broadcast %cst_2 : f32 to vector<16x16xf32>
    %c0 = arith.constant 0 : index
    %c0_3 = arith.constant 0 : index
    %c0_4 = arith.constant 0 : index
    %4 = vector.load %arg1[%c0, %c0_3, %c0_4] : memref<16x16x16xbf16, #tpu.memory_space<vmem>>, vector<1x16x16xbf16>
    %5 = vector.shape_cast %4 : vector<1x16x16xbf16> to vector<16x16xbf16>
    %6 = arith.extf %5 : vector<16x16xbf16> to vector<16x16xf32>
    %c0_5 = arith.constant 0 : index
    %c0_6 = arith.constant 0 : index
    %7 = vector.load %arg2[%c0_5, %c0_6] : memref<64x16xbf16, #tpu.memory_space<vmem>>, vector<1x16xbf16>
    %8 = arith.extf %7 : vector<1x16xbf16> to vector<1x16xf32>
    %9 = vector.broadcast %8 : vector<1x16xf32> to vector<16x16xf32>
    %10 = arith.mulf %9, %6 : vector<16x16xf32>
    %11 = arith.addf %0, %10 : vector<16x16xf32>
    %c16 = arith.constant 16 : index
    %c0_7 = arith.constant 0 : index
    %12 = vector.load %arg2[%c16, %c0_7] : memref<64x16xbf16, #tpu.memory_space<vmem>>, vector<1x16xbf16>
    %13 = arith.extf %12 : vector<1x16xbf16> to vector<1x16xf32>
    %14 = vector.broadcast %13 : vector<1x16xf32> to vector<16x16xf32>
    %15 = arith.mulf %14, %6 : vector<16x16xf32>
    %16 = arith.addf %1, %15 : vector<16x16xf32>
    %c32 = arith.constant 32 : index
    %c0_8 = arith.constant 0 : index
    %17 = vector.load %arg2[%c32, %c0_8] : memref<64x16xbf16, #tpu.memory_space<vmem>>, vector<1x16xbf16>
    %18 = arith.extf %17 : vector<1x16xbf16> to vector<1x16xf32>
    %19 = vector.broadcast %18 : vector<1x16xf32> to vector<16x16xf32>
    %20 = arith.mulf %19, %6 : vector<16x16xf32>
    %21 = arith.addf %2, %20 : vector<16x16xf32>
    %c48 = arith.constant 48 : index
    %c0_9 = arith.constant 0 : index
    %22 = vector.load %arg2[%c48, %c0_9] : memref<64x16xbf16, #tpu.memory_space<vmem>>, vector<1x16xbf16>
    %23 = arith.extf %22 : vector<1x16xbf16> to vector<1x16xf32>
    %24 = vector.broadcast %23 : vector<1x16xf32> to vector<16x16xf32>
    %25 = arith.mulf %24, %6 : vector<16x16xf32>
    %26 = arith.addf %3, %25 : vector<16x16xf32>
    %c1 = arith.constant 1 : index
    %c0_10 = arith.constant 0 : index
    %c0_11 = arith.constant 0 : index
    %27 = vector.load %arg1[%c1, %c0_10, %c0_11] : memref<16x16x16xbf16, #tpu.memory_space<vmem>>, vector<1x16x16xbf16>
    %28 = vector.shape_cast %27 : vector<1x16x16xbf16> to vector<16x16xbf16>
    %29 = arith.extf %28 : vector<16x16xbf16> to vector<16x16xf32>
    %c1_12 = arith.constant 1 : index
    %c0_13 = arith.constant 0 : index
    %30 = vector.load %arg2[%c1_12, %c0_13] : memref<64x16xbf16, #tpu.memory_space<vmem>>, vector<1x16xbf16>
    %31 = arith.extf %30 : vector<1x16xbf16> to vector<1x16xf32>
    %32 = vector.broadcast %31 : vector<1x16xf32> to vector<16x16xf32>
    %33 = arith.mulf %32, %29 : vector<16x16xf32>
    %34 = arith.addf %11, %33 : vector<16x16xf32>
    %c17 = arith.constant 17 : index
    %c0_14 = arith.constant 0 : index
    %35 = vector.load %arg2[%c17, %c0_14] : memref<64x16xbf16, #tpu.memory_space<vmem>>, vector<1x16xbf16>
    %36 = arith.extf %35 : vector<1x16xbf16> to vector<1x16xf32>
    %37 = vector.broadcast %36 : vector<1x16xf32> to vector<16x16xf32>
    %38 = arith.mulf %37, %29 : vector<16x16xf32>
    %39 = arith.addf %16, %38 : vector<16x16xf32>
    %c33 = arith.constant 33 : index
    %c0_15 = arith.constant 0 : index
    %40 = vector.load %arg2[%c33, %c0_15] : memref<64x16xbf16, #tpu.memory_space<vmem>>, vector<1x16xbf16>
    %41 = arith.extf %40 : vector<1x16xbf16> to vector<1x16xf32>
    %42 = vector.broadcast %41 : vector<1x16xf32> to vector<16x16xf32>
    %43 = arith.mulf %42, %29 : vector<16x16xf32>
    %44 = arith.addf %21, %43 : vector<16x16xf32>
    %c49 = arith.constant 49 : index
    %c0_16 = arith.constant 0 : index
    %45 = vector.load %arg2[%c49, %c0_16] : memref<64x16xbf16, #tpu.memory_space<vmem>>, vector<1x16xbf16>
    %46 = arith.extf %45 : vector<1x16xbf16> to vector<1x16xf32>
    %47 = vector.broadcast %46 : vector<1x16xf32> to vector<16x16xf32>
    %48 = arith.mulf %47, %29 : vector<16x16xf32>
    %49 = arith.addf %26, %48 : vector<16x16xf32>
    %c2 = arith.constant 2 : index
    %c0_17 = arith.constant 0 : index
    %c0_18 = arith.constant 0 : index
    %50 = vector.load %arg1[%c2, %c0_17, %c0_18] : memref<16x16x16xbf16, #tpu.memory_space<vmem>>, vector<1x16x16xbf16>
    %51 = vector.shape_cast %50 : vector<1x16x16xbf16> to vector<16x16xbf16>
    %52 = arith.extf %51 : vector<16x16xbf16> to vector<16x16xf32>
    %c2_19 = arith.constant 2 : index
    %c0_20 = arith.constant 0 : index
    %53 = vector.load %arg2[%c2_19, %c0_20] : memref<64x16xbf16, #tpu.memory_space<vmem>>, vector<1x16xbf16>
    %54 = arith.extf %53 : vector<1x16xbf16> to vector<1x16xf32>
    %55 = vector.broadcast %54 : vector<1x16xf32> to vector<16x16xf32>
    %56 = arith.mulf %55, %52 : vector<16x16xf32>
    %57 = arith.addf %34, %56 : vector<16x16xf32>
    %c18 = arith.constant 18 : index
    %c0_21 = arith.constant 0 : index
    %58 = vector.load %arg2[%c18, %c0_21] : memref<64x16xbf16, #tpu.memory_space<vmem>>, vector<1x16xbf16>
    %59 = arith.extf %58 : vector<1x16xbf16> to vector<1x16xf32>
    %60 = vector.broadcast %59 : vector<1x16xf32> to vector<16x16xf32>
    %61 = arith.mulf %60, %52 : vector<16x16xf32>
    %62 = arith.addf %39, %61 : vector<16x16xf32>
    %c34 = arith.constant 34 : index
    %c0_22 = arith.constant 0 : index
    %63 = vector.load %arg2[%c34, %c0_22] : memref<64x16xbf16, #tpu.memory_space<vmem>>, vector<1x16xbf16>
    %64 = arith.extf %63 : vector<1x16xbf16> to vector<1x16xf32>
    %65 = vector.broadcast %64 : vector<1x16xf32> to vector<16x16xf32>
    %66 = arith.mulf %65, %52 : vector<16x16xf32>
    %67 = arith.addf %44, %66 : vector<16x16xf32>
    %c50 = arith.constant 50 : index
    %c0_23 = arith.constant 0 : index
    %68 = vector.load %arg2[%c50, %c0_23] : memref<64x16xbf16, #tpu.memory_space<vmem>>, vector<1x16xbf16>
    %69 = arith.extf %68 : vector<1x16xbf16> to vector<1x16xf32>
    %70 = vector.broadcast %69 : vector<1x16xf32> to vector<16x16xf32>
    %71 = arith.mulf %70, %52 : vector<16x16xf32>
    %72 = arith.addf %49, %71 : vector<16x16xf32>
    %c3 = arith.constant 3 : index
    %c0_24 = arith.constant 0 : index
    %c0_25 = arith.constant 0 : index
    %73 = vector.load %arg1[%c3, %c0_24, %c0_25] : memref<16x16x16xbf16, #tpu.memory_space<vmem>>, vector<1x16x16xbf16>
    %74 = vector.shape_cast %73 : vector<1x16x16xbf16> to vector<16x16xbf16>
    %75 = arith.extf %74 : vector<16x16xbf16> to vector<16x16xf32>
    %c3_26 = arith.constant 3 : index
    %c0_27 = arith.constant 0 : index
    %76 = vector.load %arg2[%c3_26, %c0_27] : memref<64x16xbf16, #tpu.memory_space<vmem>>, vector<1x16xbf16>
    %77 = arith.extf %76 : vector<1x16xbf16> to vector<1x16xf32>
    %78 = vector.broadcast %77 : vector<1x16xf32> to vector<16x16xf32>
    %79 = arith.mulf %78, %75 : vector<16x16xf32>
    %80 = arith.addf %57, %79 : vector<16x16xf32>
    %c19 = arith.constant 19 : index
    %c0_28 = arith.constant 0 : index
    %81 = vector.load %arg2[%c19, %c0_28] : memref<64x16xbf16, #tpu.memory_space<vmem>>, vector<1x16xbf16>
    %82 = arith.extf %81 : vector<1x16xbf16> to vector<1x16xf32>
    %83 = vector.broadcast %82 : vector<1x16xf32> to vector<16x16xf32>
    %84 = arith.mulf %83, %75 : vector<16x16xf32>
    %85 = arith.addf %62, %84 : vector<16x16xf32>
    %c35 = arith.constant 35 : index
    %c0_29 = arith.constant 0 : index
    %86 = vector.load %arg2[%c35, %c0_29] : memref<64x16xbf16, #tpu.memory_space<vmem>>, vector<1x16xbf16>
    %87 = arith.extf %86 : vector<1x16xbf16> to vector<1x16xf32>
    %88 = vector.broadcast %87 : vector<1x16xf32> to vector<16x16xf32>
    %89 = arith.mulf %88, %75 : vector<16x16xf32>
    %90 = arith.addf %67, %89 : vector<16x16xf32>
    %c51 = arith.constant 51 : index
    %c0_30 = arith.constant 0 : index
    %91 = vector.load %arg2[%c51, %c0_30] : memref<64x16xbf16, #tpu.memory_space<vmem>>, vector<1x16xbf16>
    %92 = arith.extf %91 : vector<1x16xbf16> to vector<1x16xf32>
    %93 = vector.broadcast %92 : vector<1x16xf32> to vector<16x16xf32>
    %94 = arith.mulf %93, %75 : vector<16x16xf32>
    %95 = arith.addf %72, %94 : vector<16x16xf32>
    %c4 = arith.constant 4 : index
    %c0_31 = arith.constant 0 : index
    %c0_32 = arith.constant 0 : index
    %96 = vector.load %arg1[%c4, %c0_31, %c0_32] : memref<16x16x16xbf16, #tpu.memory_space<vmem>>, vector<1x16x16xbf16>
    %97 = vector.shape_cast %96 : vector<1x16x16xbf16> to vector<16x16xbf16>
    %98 = arith.extf %97 : vector<16x16xbf16> to vector<16x16xf32>
    %c4_33 = arith.constant 4 : index
    %c0_34 = arith.constant 0 : index
    %99 = vector.load %arg2[%c4_33, %c0_34] : memref<64x16xbf16, #tpu.memory_space<vmem>>, vector<1x16xbf16>
    %100 = arith.extf %99 : vector<1x16xbf16> to vector<1x16xf32>
    %101 = vector.broadcast %100 : vector<1x16xf32> to vector<16x16xf32>
    %102 = arith.mulf %101, %98 : vector<16x16xf32>
    %103 = arith.addf %80, %102 : vector<16x16xf32>
    %c20 = arith.constant 20 : index
    %c0_35 = arith.constant 0 : index
    %104 = vector.load %arg2[%c20, %c0_35] : memref<64x16xbf16, #tpu.memory_space<vmem>>, vector<1x16xbf16>
    %105 = arith.extf %104 : vector<1x16xbf16> to vector<1x16xf32>
    %106 = vector.broadcast %105 : vector<1x16xf32> to vector<16x16xf32>
    %107 = arith.mulf %106, %98 : vector<16x16xf32>
    %108 = arith.addf %85, %107 : vector<16x16xf32>
    %c36 = arith.constant 36 : index
    %c0_36 = arith.constant 0 : index
    %109 = vector.load %arg2[%c36, %c0_36] : memref<64x16xbf16, #tpu.memory_space<vmem>>, vector<1x16xbf16>
    %110 = arith.extf %109 : vector<1x16xbf16> to vector<1x16xf32>
    %111 = vector.broadcast %110 : vector<1x16xf32> to vector<16x16xf32>
    %112 = arith.mulf %111, %98 : vector<16x16xf32>
    %113 = arith.addf %90, %112 : vector<16x16xf32>
    %c52 = arith.constant 52 : index
    %c0_37 = arith.constant 0 : index
    %114 = vector.load %arg2[%c52, %c0_37] : memref<64x16xbf16, #tpu.memory_space<vmem>>, vector<1x16xbf16>
    %115 = arith.extf %114 : vector<1x16xbf16> to vector<1x16xf32>
    %116 = vector.broadcast %115 : vector<1x16xf32> to vector<16x16xf32>
    %117 = arith.mulf %116, %98 : vector<16x16xf32>
    %118 = arith.addf %95, %117 : vector<16x16xf32>
    %c5 = arith.constant 5 : index
    %c0_38 = arith.constant 0 : index
    %c0_39 = arith.constant 0 : index
    %119 = vector.load %arg1[%c5, %c0_38, %c0_39] : memref<16x16x16xbf16, #tpu.memory_space<vmem>>, vector<1x16x16xbf16>
    %120 = vector.shape_cast %119 : vector<1x16x16xbf16> to vector<16x16xbf16>
    %121 = arith.extf %120 : vector<16x16xbf16> to vector<16x16xf32>
    %c5_40 = arith.constant 5 : index
    %c0_41 = arith.constant 0 : index
    %122 = vector.load %arg2[%c5_40, %c0_41] : memref<64x16xbf16, #tpu.memory_space<vmem>>, vector<1x16xbf16>
    %123 = arith.extf %122 : vector<1x16xbf16> to vector<1x16xf32>
    %124 = vector.broadcast %123 : vector<1x16xf32> to vector<16x16xf32>
    %125 = arith.mulf %124, %121 : vector<16x16xf32>
    %126 = arith.addf %103, %125 : vector<16x16xf32>
    %c21 = arith.constant 21 : index
    %c0_42 = arith.constant 0 : index
    %127 = vector.load %arg2[%c21, %c0_42] : memref<64x16xbf16, #tpu.memory_space<vmem>>, vector<1x16xbf16>
    %128 = arith.extf %127 : vector<1x16xbf16> to vector<1x16xf32>
    %129 = vector.broadcast %128 : vector<1x16xf32> to vector<16x16xf32>
    %130 = arith.mulf %129, %121 : vector<16x16xf32>
    %131 = arith.addf %108, %130 : vector<16x16xf32>
    %c37 = arith.constant 37 : index
    %c0_43 = arith.constant 0 : index
    %132 = vector.load %arg2[%c37, %c0_43] : memref<64x16xbf16, #tpu.memory_space<vmem>>, vector<1x16xbf16>
    %133 = arith.extf %132 : vector<1x16xbf16> to vector<1x16xf32>
    %134 = vector.broadcast %133 : vector<1x16xf32> to vector<16x16xf32>
    %135 = arith.mulf %134, %121 : vector<16x16xf32>
    %136 = arith.addf %113, %135 : vector<16x16xf32>
    %c53 = arith.constant 53 : index
    %c0_44 = arith.constant 0 : index
    %137 = vector.load %arg2[%c53, %c0_44] : memref<64x16xbf16, #tpu.memory_space<vmem>>, vector<1x16xbf16>
    %138 = arith.extf %137 : vector<1x16xbf16> to vector<1x16xf32>
    %139 = vector.broadcast %138 : vector<1x16xf32> to vector<16x16xf32>
    %140 = arith.mulf %139, %121 : vector<16x16xf32>
    %141 = arith.addf %118, %140 : vector<16x16xf32>
    %c6 = arith.constant 6 : index
    %c0_45 = arith.constant 0 : index
    %c0_46 = arith.constant 0 : index
    %142 = vector.load %arg1[%c6, %c0_45, %c0_46] : memref<16x16x16xbf16, #tpu.memory_space<vmem>>, vector<1x16x16xbf16>
    %143 = vector.shape_cast %142 : vector<1x16x16xbf16> to vector<16x16xbf16>
    %144 = arith.extf %143 : vector<16x16xbf16> to vector<16x16xf32>
    %c6_47 = arith.constant 6 : index
    %c0_48 = arith.constant 0 : index
    %145 = vector.load %arg2[%c6_47, %c0_48] : memref<64x16xbf16, #tpu.memory_space<vmem>>, vector<1x16xbf16>
    %146 = arith.extf %145 : vector<1x16xbf16> to vector<1x16xf32>
    %147 = vector.broadcast %146 : vector<1x16xf32> to vector<16x16xf32>
    %148 = arith.mulf %147, %144 : vector<16x16xf32>
    %149 = arith.addf %126, %148 : vector<16x16xf32>
    %c22 = arith.constant 22 : index
    %c0_49 = arith.constant 0 : index
    %150 = vector.load %arg2[%c22, %c0_49] : memref<64x16xbf16, #tpu.memory_space<vmem>>, vector<1x16xbf16>
    %151 = arith.extf %150 : vector<1x16xbf16> to vector<1x16xf32>
    %152 = vector.broadcast %151 : vector<1x16xf32> to vector<16x16xf32>
    %153 = arith.mulf %152, %144 : vector<16x16xf32>
    %154 = arith.addf %131, %153 : vector<16x16xf32>
    %c38 = arith.constant 38 : index
    %c0_50 = arith.constant 0 : index
    %155 = vector.load %arg2[%c38, %c0_50] : memref<64x16xbf16, #tpu.memory_space<vmem>>, vector<1x16xbf16>
    %156 = arith.extf %155 : vector<1x16xbf16> to vector<1x16xf32>
    %157 = vector.broadcast %156 : vector<1x16xf32> to vector<16x16xf32>
    %158 = arith.mulf %157, %144 : vector<16x16xf32>
    %159 = arith.addf %136, %158 : vector<16x16xf32>
    %c54 = arith.constant 54 : index
    %c0_51 = arith.constant 0 : index
    %160 = vector.load %arg2[%c54, %c0_51] : memref<64x16xbf16, #tpu.memory_space<vmem>>, vector<1x16xbf16>
    %161 = arith.extf %160 : vector<1x16xbf16> to vector<1x16xf32>
    %162 = vector.broadcast %161 : vector<1x16xf32> to vector<16x16xf32>
    %163 = arith.mulf %162, %144 : vector<16x16xf32>
    %164 = arith.addf %141, %163 : vector<16x16xf32>
    %c7 = arith.constant 7 : index
    %c0_52 = arith.constant 0 : index
    %c0_53 = arith.constant 0 : index
    %165 = vector.load %arg1[%c7, %c0_52, %c0_53] : memref<16x16x16xbf16, #tpu.memory_space<vmem>>, vector<1x16x16xbf16>
    %166 = vector.shape_cast %165 : vector<1x16x16xbf16> to vector<16x16xbf16>
    %167 = arith.extf %166 : vector<16x16xbf16> to vector<16x16xf32>
    %c7_54 = arith.constant 7 : index
    %c0_55 = arith.constant 0 : index
    %168 = vector.load %arg2[%c7_54, %c0_55] : memref<64x16xbf16, #tpu.memory_space<vmem>>, vector<1x16xbf16>
    %169 = arith.extf %168 : vector<1x16xbf16> to vector<1x16xf32>
    %170 = vector.broadcast %169 : vector<1x16xf32> to vector<16x16xf32>
    %171 = arith.mulf %170, %167 : vector<16x16xf32>
    %172 = arith.addf %149, %171 : vector<16x16xf32>
    %c23 = arith.constant 23 : index
    %c0_56 = arith.constant 0 : index
    %173 = vector.load %arg2[%c23, %c0_56] : memref<64x16xbf16, #tpu.memory_space<vmem>>, vector<1x16xbf16>
    %174 = arith.extf %173 : vector<1x16xbf16> to vector<1x16xf32>
    %175 = vector.broadcast %174 : vector<1x16xf32> to vector<16x16xf32>
    %176 = arith.mulf %175, %167 : vector<16x16xf32>
    %177 = arith.addf %154, %176 : vector<16x16xf32>
    %c39 = arith.constant 39 : index
    %c0_57 = arith.constant 0 : index
    %178 = vector.load %arg2[%c39, %c0_57] : memref<64x16xbf16, #tpu.memory_space<vmem>>, vector<1x16xbf16>
    %179 = arith.extf %178 : vector<1x16xbf16> to vector<1x16xf32>
    %180 = vector.broadcast %179 : vector<1x16xf32> to vector<16x16xf32>
    %181 = arith.mulf %180, %167 : vector<16x16xf32>
    %182 = arith.addf %159, %181 : vector<16x16xf32>
    %c55 = arith.constant 55 : index
    %c0_58 = arith.constant 0 : index
    %183 = vector.load %arg2[%c55, %c0_58] : memref<64x16xbf16, #tpu.memory_space<vmem>>, vector<1x16xbf16>
    %184 = arith.extf %183 : vector<1x16xbf16> to vector<1x16xf32>
    %185 = vector.broadcast %184 : vector<1x16xf32> to vector<16x16xf32>
    %186 = arith.mulf %185, %167 : vector<16x16xf32>
    %187 = arith.addf %164, %186 : vector<16x16xf32>
    %c8 = arith.constant 8 : index
    %c0_59 = arith.constant 0 : index
    %c0_60 = arith.constant 0 : index
    %188 = vector.load %arg1[%c8, %c0_59, %c0_60] : memref<16x16x16xbf16, #tpu.memory_space<vmem>>, vector<1x16x16xbf16>
    %189 = vector.shape_cast %188 : vector<1x16x16xbf16> to vector<16x16xbf16>
    %190 = arith.extf %189 : vector<16x16xbf16> to vector<16x16xf32>
    %c8_61 = arith.constant 8 : index
    %c0_62 = arith.constant 0 : index
    %191 = vector.load %arg2[%c8_61, %c0_62] : memref<64x16xbf16, #tpu.memory_space<vmem>>, vector<1x16xbf16>
    %192 = arith.extf %191 : vector<1x16xbf16> to vector<1x16xf32>
    %193 = vector.broadcast %192 : vector<1x16xf32> to vector<16x16xf32>
    %194 = arith.mulf %193, %190 : vector<16x16xf32>
    %195 = arith.addf %172, %194 : vector<16x16xf32>
    %c24 = arith.constant 24 : index
    %c0_63 = arith.constant 0 : index
    %196 = vector.load %arg2[%c24, %c0_63] : memref<64x16xbf16, #tpu.memory_space<vmem>>, vector<1x16xbf16>
    %197 = arith.extf %196 : vector<1x16xbf16> to vector<1x16xf32>
    %198 = vector.broadcast %197 : vector<1x16xf32> to vector<16x16xf32>
    %199 = arith.mulf %198, %190 : vector<16x16xf32>
    %200 = arith.addf %177, %199 : vector<16x16xf32>
    %c40 = arith.constant 40 : index
    %c0_64 = arith.constant 0 : index
    %201 = vector.load %arg2[%c40, %c0_64] : memref<64x16xbf16, #tpu.memory_space<vmem>>, vector<1x16xbf16>
    %202 = arith.extf %201 : vector<1x16xbf16> to vector<1x16xf32>
    %203 = vector.broadcast %202 : vector<1x16xf32> to vector<16x16xf32>
    %204 = arith.mulf %203, %190 : vector<16x16xf32>
    %205 = arith.addf %182, %204 : vector<16x16xf32>
    %c56 = arith.constant 56 : index
    %c0_65 = arith.constant 0 : index
    %206 = vector.load %arg2[%c56, %c0_65] : memref<64x16xbf16, #tpu.memory_space<vmem>>, vector<1x16xbf16>
    %207 = arith.extf %206 : vector<1x16xbf16> to vector<1x16xf32>
    %208 = vector.broadcast %207 : vector<1x16xf32> to vector<16x16xf32>
    %209 = arith.mulf %208, %190 : vector<16x16xf32>
    %210 = arith.addf %187, %209 : vector<16x16xf32>
    %c9 = arith.constant 9 : index
    %c0_66 = arith.constant 0 : index
    %c0_67 = arith.constant 0 : index
    %211 = vector.load %arg1[%c9, %c0_66, %c0_67] : memref<16x16x16xbf16, #tpu.memory_space<vmem>>, vector<1x16x16xbf16>
    %212 = vector.shape_cast %211 : vector<1x16x16xbf16> to vector<16x16xbf16>
    %213 = arith.extf %212 : vector<16x16xbf16> to vector<16x16xf32>
    %c9_68 = arith.constant 9 : index
    %c0_69 = arith.constant 0 : index
    %214 = vector.load %arg2[%c9_68, %c0_69] : memref<64x16xbf16, #tpu.memory_space<vmem>>, vector<1x16xbf16>
    %215 = arith.extf %214 : vector<1x16xbf16> to vector<1x16xf32>
    %216 = vector.broadcast %215 : vector<1x16xf32> to vector<16x16xf32>
    %217 = arith.mulf %216, %213 : vector<16x16xf32>
    %218 = arith.addf %195, %217 : vector<16x16xf32>
    %c25 = arith.constant 25 : index
    %c0_70 = arith.constant 0 : index
    %219 = vector.load %arg2[%c25, %c0_70] : memref<64x16xbf16, #tpu.memory_space<vmem>>, vector<1x16xbf16>
    %220 = arith.extf %219 : vector<1x16xbf16> to vector<1x16xf32>
    %221 = vector.broadcast %220 : vector<1x16xf32> to vector<16x16xf32>
    %222 = arith.mulf %221, %213 : vector<16x16xf32>
    %223 = arith.addf %200, %222 : vector<16x16xf32>
    %c41 = arith.constant 41 : index
    %c0_71 = arith.constant 0 : index
    %224 = vector.load %arg2[%c41, %c0_71] : memref<64x16xbf16, #tpu.memory_space<vmem>>, vector<1x16xbf16>
    %225 = arith.extf %224 : vector<1x16xbf16> to vector<1x16xf32>
    %226 = vector.broadcast %225 : vector<1x16xf32> to vector<16x16xf32>
    %227 = arith.mulf %226, %213 : vector<16x16xf32>
    %228 = arith.addf %205, %227 : vector<16x16xf32>
    %c57 = arith.constant 57 : index
    %c0_72 = arith.constant 0 : index
    %229 = vector.load %arg2[%c57, %c0_72] : memref<64x16xbf16, #tpu.memory_space<vmem>>, vector<1x16xbf16>
    %230 = arith.extf %229 : vector<1x16xbf16> to vector<1x16xf32>
    %231 = vector.broadcast %230 : vector<1x16xf32> to vector<16x16xf32>
    %232 = arith.mulf %231, %213 : vector<16x16xf32>
    %233 = arith.addf %210, %232 : vector<16x16xf32>
    %c10 = arith.constant 10 : index
    %c0_73 = arith.constant 0 : index
    %c0_74 = arith.constant 0 : index
    %234 = vector.load %arg1[%c10, %c0_73, %c0_74] : memref<16x16x16xbf16, #tpu.memory_space<vmem>>, vector<1x16x16xbf16>
    %235 = vector.shape_cast %234 : vector<1x16x16xbf16> to vector<16x16xbf16>
    %236 = arith.extf %235 : vector<16x16xbf16> to vector<16x16xf32>
    %c10_75 = arith.constant 10 : index
    %c0_76 = arith.constant 0 : index
    %237 = vector.load %arg2[%c10_75, %c0_76] : memref<64x16xbf16, #tpu.memory_space<vmem>>, vector<1x16xbf16>
    %238 = arith.extf %237 : vector<1x16xbf16> to vector<1x16xf32>
    %239 = vector.broadcast %238 : vector<1x16xf32> to vector<16x16xf32>
    %240 = arith.mulf %239, %236 : vector<16x16xf32>
    %241 = arith.addf %218, %240 : vector<16x16xf32>
    %c26 = arith.constant 26 : index
    %c0_77 = arith.constant 0 : index
    %242 = vector.load %arg2[%c26, %c0_77] : memref<64x16xbf16, #tpu.memory_space<vmem>>, vector<1x16xbf16>
    %243 = arith.extf %242 : vector<1x16xbf16> to vector<1x16xf32>
    %244 = vector.broadcast %243 : vector<1x16xf32> to vector<16x16xf32>
    %245 = arith.mulf %244, %236 : vector<16x16xf32>
    %246 = arith.addf %223, %245 : vector<16x16xf32>
    %c42 = arith.constant 42 : index
    %c0_78 = arith.constant 0 : index
    %247 = vector.load %arg2[%c42, %c0_78] : memref<64x16xbf16, #tpu.memory_space<vmem>>, vector<1x16xbf16>
    %248 = arith.extf %247 : vector<1x16xbf16> to vector<1x16xf32>
    %249 = vector.broadcast %248 : vector<1x16xf32> to vector<16x16xf32>
    %250 = arith.mulf %249, %236 : vector<16x16xf32>
    %251 = arith.addf %228, %250 : vector<16x16xf32>
    %c58 = arith.constant 58 : index
    %c0_79 = arith.constant 0 : index
    %252 = vector.load %arg2[%c58, %c0_79] : memref<64x16xbf16, #tpu.memory_space<vmem>>, vector<1x16xbf16>
    %253 = arith.extf %252 : vector<1x16xbf16> to vector<1x16xf32>
    %254 = vector.broadcast %253 : vector<1x16xf32> to vector<16x16xf32>
    %255 = arith.mulf %254, %236 : vector<16x16xf32>
    %256 = arith.addf %233, %255 : vector<16x16xf32>
    %c11 = arith.constant 11 : index
    %c0_80 = arith.constant 0 : index
    %c0_81 = arith.constant 0 : index
    %257 = vector.load %arg1[%c11, %c0_80, %c0_81] : memref<16x16x16xbf16, #tpu.memory_space<vmem>>, vector<1x16x16xbf16>
    %258 = vector.shape_cast %257 : vector<1x16x16xbf16> to vector<16x16xbf16>
    %259 = arith.extf %258 : vector<16x16xbf16> to vector<16x16xf32>
    %c11_82 = arith.constant 11 : index
    %c0_83 = arith.constant 0 : index
    %260 = vector.load %arg2[%c11_82, %c0_83] : memref<64x16xbf16, #tpu.memory_space<vmem>>, vector<1x16xbf16>
    %261 = arith.extf %260 : vector<1x16xbf16> to vector<1x16xf32>
    %262 = vector.broadcast %261 : vector<1x16xf32> to vector<16x16xf32>
    %263 = arith.mulf %262, %259 : vector<16x16xf32>
    %264 = arith.addf %241, %263 : vector<16x16xf32>
    %c27 = arith.constant 27 : index
    %c0_84 = arith.constant 0 : index
    %265 = vector.load %arg2[%c27, %c0_84] : memref<64x16xbf16, #tpu.memory_space<vmem>>, vector<1x16xbf16>
    %266 = arith.extf %265 : vector<1x16xbf16> to vector<1x16xf32>
    %267 = vector.broadcast %266 : vector<1x16xf32> to vector<16x16xf32>
    %268 = arith.mulf %267, %259 : vector<16x16xf32>
    %269 = arith.addf %246, %268 : vector<16x16xf32>
    %c43 = arith.constant 43 : index
    %c0_85 = arith.constant 0 : index
    %270 = vector.load %arg2[%c43, %c0_85] : memref<64x16xbf16, #tpu.memory_space<vmem>>, vector<1x16xbf16>
    %271 = arith.extf %270 : vector<1x16xbf16> to vector<1x16xf32>
    %272 = vector.broadcast %271 : vector<1x16xf32> to vector<16x16xf32>
    %273 = arith.mulf %272, %259 : vector<16x16xf32>
    %274 = arith.addf %251, %273 : vector<16x16xf32>
    %c59 = arith.constant 59 : index
    %c0_86 = arith.constant 0 : index
    %275 = vector.load %arg2[%c59, %c0_86] : memref<64x16xbf16, #tpu.memory_space<vmem>>, vector<1x16xbf16>
    %276 = arith.extf %275 : vector<1x16xbf16> to vector<1x16xf32>
    %277 = vector.broadcast %276 : vector<1x16xf32> to vector<16x16xf32>
    %278 = arith.mulf %277, %259 : vector<16x16xf32>
    %279 = arith.addf %256, %278 : vector<16x16xf32>
    %c12 = arith.constant 12 : index
    %c0_87 = arith.constant 0 : index
    %c0_88 = arith.constant 0 : index
    %280 = vector.load %arg1[%c12, %c0_87, %c0_88] : memref<16x16x16xbf16, #tpu.memory_space<vmem>>, vector<1x16x16xbf16>
    %281 = vector.shape_cast %280 : vector<1x16x16xbf16> to vector<16x16xbf16>
    %282 = arith.extf %281 : vector<16x16xbf16> to vector<16x16xf32>
    %c12_89 = arith.constant 12 : index
    %c0_90 = arith.constant 0 : index
    %283 = vector.load %arg2[%c12_89, %c0_90] : memref<64x16xbf16, #tpu.memory_space<vmem>>, vector<1x16xbf16>
    %284 = arith.extf %283 : vector<1x16xbf16> to vector<1x16xf32>
    %285 = vector.broadcast %284 : vector<1x16xf32> to vector<16x16xf32>
    %286 = arith.mulf %285, %282 : vector<16x16xf32>
    %287 = arith.addf %264, %286 : vector<16x16xf32>
    %c28 = arith.constant 28 : index
    %c0_91 = arith.constant 0 : index
    %288 = vector.load %arg2[%c28, %c0_91] : memref<64x16xbf16, #tpu.memory_space<vmem>>, vector<1x16xbf16>
    %289 = arith.extf %288 : vector<1x16xbf16> to vector<1x16xf32>
    %290 = vector.broadcast %289 : vector<1x16xf32> to vector<16x16xf32>
    %291 = arith.mulf %290, %282 : vector<16x16xf32>
    %292 = arith.addf %269, %291 : vector<16x16xf32>
    %c44 = arith.constant 44 : index
    %c0_92 = arith.constant 0 : index
    %293 = vector.load %arg2[%c44, %c0_92] : memref<64x16xbf16, #tpu.memory_space<vmem>>, vector<1x16xbf16>
    %294 = arith.extf %293 : vector<1x16xbf16> to vector<1x16xf32>
    %295 = vector.broadcast %294 : vector<1x16xf32> to vector<16x16xf32>
    %296 = arith.mulf %295, %282 : vector<16x16xf32>
    %297 = arith.addf %274, %296 : vector<16x16xf32>
    %c60 = arith.constant 60 : index
    %c0_93 = arith.constant 0 : index
    %298 = vector.load %arg2[%c60, %c0_93] : memref<64x16xbf16, #tpu.memory_space<vmem>>, vector<1x16xbf16>
    %299 = arith.extf %298 : vector<1x16xbf16> to vector<1x16xf32>
    %300 = vector.broadcast %299 : vector<1x16xf32> to vector<16x16xf32>
    %301 = arith.mulf %300, %282 : vector<16x16xf32>
    %302 = arith.addf %279, %301 : vector<16x16xf32>
    %c13 = arith.constant 13 : index
    %c0_94 = arith.constant 0 : index
    %c0_95 = arith.constant 0 : index
    %303 = vector.load %arg1[%c13, %c0_94, %c0_95] : memref<16x16x16xbf16, #tpu.memory_space<vmem>>, vector<1x16x16xbf16>
    %304 = vector.shape_cast %303 : vector<1x16x16xbf16> to vector<16x16xbf16>
    %305 = arith.extf %304 : vector<16x16xbf16> to vector<16x16xf32>
    %c13_96 = arith.constant 13 : index
    %c0_97 = arith.constant 0 : index
    %306 = vector.load %arg2[%c13_96, %c0_97] : memref<64x16xbf16, #tpu.memory_space<vmem>>, vector<1x16xbf16>
    %307 = arith.extf %306 : vector<1x16xbf16> to vector<1x16xf32>
    %308 = vector.broadcast %307 : vector<1x16xf32> to vector<16x16xf32>
    %309 = arith.mulf %308, %305 : vector<16x16xf32>
    %310 = arith.addf %287, %309 : vector<16x16xf32>
    %c29 = arith.constant 29 : index
    %c0_98 = arith.constant 0 : index
    %311 = vector.load %arg2[%c29, %c0_98] : memref<64x16xbf16, #tpu.memory_space<vmem>>, vector<1x16xbf16>
    %312 = arith.extf %311 : vector<1x16xbf16> to vector<1x16xf32>
    %313 = vector.broadcast %312 : vector<1x16xf32> to vector<16x16xf32>
    %314 = arith.mulf %313, %305 : vector<16x16xf32>
    %315 = arith.addf %292, %314 : vector<16x16xf32>
    %c45 = arith.constant 45 : index
    %c0_99 = arith.constant 0 : index
    %316 = vector.load %arg2[%c45, %c0_99] : memref<64x16xbf16, #tpu.memory_space<vmem>>, vector<1x16xbf16>
    %317 = arith.extf %316 : vector<1x16xbf16> to vector<1x16xf32>
    %318 = vector.broadcast %317 : vector<1x16xf32> to vector<16x16xf32>
    %319 = arith.mulf %318, %305 : vector<16x16xf32>
    %320 = arith.addf %297, %319 : vector<16x16xf32>
    %c61 = arith.constant 61 : index
    %c0_100 = arith.constant 0 : index
    %321 = vector.load %arg2[%c61, %c0_100] : memref<64x16xbf16, #tpu.memory_space<vmem>>, vector<1x16xbf16>
    %322 = arith.extf %321 : vector<1x16xbf16> to vector<1x16xf32>
    %323 = vector.broadcast %322 : vector<1x16xf32> to vector<16x16xf32>
    %324 = arith.mulf %323, %305 : vector<16x16xf32>
    %325 = arith.addf %302, %324 : vector<16x16xf32>
    %c14 = arith.constant 14 : index
    %c0_101 = arith.constant 0 : index
    %c0_102 = arith.constant 0 : index
    %326 = vector.load %arg1[%c14, %c0_101, %c0_102] : memref<16x16x16xbf16, #tpu.memory_space<vmem>>, vector<1x16x16xbf16>
    %327 = vector.shape_cast %326 : vector<1x16x16xbf16> to vector<16x16xbf16>
    %328 = arith.extf %327 : vector<16x16xbf16> to vector<16x16xf32>
    %c14_103 = arith.constant 14 : index
    %c0_104 = arith.constant 0 : index
    %329 = vector.load %arg2[%c14_103, %c0_104] : memref<64x16xbf16, #tpu.memory_space<vmem>>, vector<1x16xbf16>
    %330 = arith.extf %329 : vector<1x16xbf16> to vector<1x16xf32>
    %331 = vector.broadcast %330 : vector<1x16xf32> to vector<16x16xf32>
    %332 = arith.mulf %331, %328 : vector<16x16xf32>
    %333 = arith.addf %310, %332 : vector<16x16xf32>
    %c30 = arith.constant 30 : index
    %c0_105 = arith.constant 0 : index
    %334 = vector.load %arg2[%c30, %c0_105] : memref<64x16xbf16, #tpu.memory_space<vmem>>, vector<1x16xbf16>
    %335 = arith.extf %334 : vector<1x16xbf16> to vector<1x16xf32>
    %336 = vector.broadcast %335 : vector<1x16xf32> to vector<16x16xf32>
    %337 = arith.mulf %336, %328 : vector<16x16xf32>
    %338 = arith.addf %315, %337 : vector<16x16xf32>
    %c46 = arith.constant 46 : index
    %c0_106 = arith.constant 0 : index
    %339 = vector.load %arg2[%c46, %c0_106] : memref<64x16xbf16, #tpu.memory_space<vmem>>, vector<1x16xbf16>
    %340 = arith.extf %339 : vector<1x16xbf16> to vector<1x16xf32>
    %341 = vector.broadcast %340 : vector<1x16xf32> to vector<16x16xf32>
    %342 = arith.mulf %341, %328 : vector<16x16xf32>
    %343 = arith.addf %320, %342 : vector<16x16xf32>
    %c62 = arith.constant 62 : index
    %c0_107 = arith.constant 0 : index
    %344 = vector.load %arg2[%c62, %c0_107] : memref<64x16xbf16, #tpu.memory_space<vmem>>, vector<1x16xbf16>
    %345 = arith.extf %344 : vector<1x16xbf16> to vector<1x16xf32>
    %346 = vector.broadcast %345 : vector<1x16xf32> to vector<16x16xf32>
    %347 = arith.mulf %346, %328 : vector<16x16xf32>
    %348 = arith.addf %325, %347 : vector<16x16xf32>
    %c15 = arith.constant 15 : index
    %c0_108 = arith.constant 0 : index
    %c0_109 = arith.constant 0 : index
    %349 = vector.load %arg1[%c15, %c0_108, %c0_109] : memref<16x16x16xbf16, #tpu.memory_space<vmem>>, vector<1x16x16xbf16>
    %350 = vector.shape_cast %349 : vector<1x16x16xbf16> to vector<16x16xbf16>
    %351 = arith.extf %350 : vector<16x16xbf16> to vector<16x16xf32>
    %c15_110 = arith.constant 15 : index
    %c0_111 = arith.constant 0 : index
    %352 = vector.load %arg2[%c15_110, %c0_111] : memref<64x16xbf16, #tpu.memory_space<vmem>>, vector<1x16xbf16>
    %353 = arith.extf %352 : vector<1x16xbf16> to vector<1x16xf32>
    %354 = vector.broadcast %353 : vector<1x16xf32> to vector<16x16xf32>
    %355 = arith.mulf %354, %351 : vector<16x16xf32>
    %356 = arith.addf %333, %355 : vector<16x16xf32>
    %c31 = arith.constant 31 : index
    %c0_112 = arith.constant 0 : index
    %357 = vector.load %arg2[%c31, %c0_112] : memref<64x16xbf16, #tpu.memory_space<vmem>>, vector<1x16xbf16>
    %358 = arith.extf %357 : vector<1x16xbf16> to vector<1x16xf32>
    %359 = vector.broadcast %358 : vector<1x16xf32> to vector<16x16xf32>
    %360 = arith.mulf %359, %351 : vector<16x16xf32>
    %361 = arith.addf %338, %360 : vector<16x16xf32>
    %c47 = arith.constant 47 : index
    %c0_113 = arith.constant 0 : index
    %362 = vector.load %arg2[%c47, %c0_113] : memref<64x16xbf16, #tpu.memory_space<vmem>>, vector<1x16xbf16>
    %363 = arith.extf %362 : vector<1x16xbf16> to vector<1x16xf32>
    %364 = vector.broadcast %363 : vector<1x16xf32> to vector<16x16xf32>
    %365 = arith.mulf %364, %351 : vector<16x16xf32>
    %366 = arith.addf %343, %365 : vector<16x16xf32>
    %c63 = arith.constant 63 : index
    %c0_114 = arith.constant 0 : index
    %367 = vector.load %arg2[%c63, %c0_114] : memref<64x16xbf16, #tpu.memory_space<vmem>>, vector<1x16xbf16>
    %368 = arith.extf %367 : vector<1x16xbf16> to vector<1x16xf32>
    %369 = vector.broadcast %368 : vector<1x16xf32> to vector<16x16xf32>
    %370 = arith.mulf %369, %351 : vector<16x16xf32>
    %371 = arith.addf %348, %370 : vector<16x16xf32>
    %c0_115 = arith.constant 0 : index
    %c0_116 = arith.constant 0 : index
    %372 = vector.load %arg7[%c0_115, %c0_116] : memref<64x16xf32, #tpu.memory_space<vmem>>, vector<16x16xf32>
    tpu.vector_store %arg7[%c0_115, %c0_116], %356 {strides = array<i32>} : memref<64x16xf32, #tpu.memory_space<vmem>>, vector<16x16xf32>,
    %c16_117 = arith.constant 16 : index
    %c0_118 = arith.constant 0 : index
    %373 = vector.load %arg7[%c16_117, %c0_118] : memref<64x16xf32, #tpu.memory_space<vmem>>, vector<16x16xf32>
    tpu.vector_store %arg7[%c16_117, %c0_118], %361 {strides = array<i32>} : memref<64x16xf32, #tpu.memory_space<vmem>>, vector<16x16xf32>,
    %c32_119 = arith.constant 32 : index
    %c0_120 = arith.constant 0 : index
    %374 = vector.load %arg7[%c32_119, %c0_120] : memref<64x16xf32, #tpu.memory_space<vmem>>, vector<16x16xf32>
    tpu.vector_store %arg7[%c32_119, %c0_120], %366 {strides = array<i32>} : memref<64x16xf32, #tpu.memory_space<vmem>>, vector<16x16xf32>,
    %c48_121 = arith.constant 48 : index
    %c0_122 = arith.constant 0 : index
    %375 = vector.load %arg7[%c48_121, %c0_122] : memref<64x16xf32, #tpu.memory_space<vmem>>, vector<16x16xf32>
    tpu.vector_store %arg7[%c48_121, %c0_122], %371 {strides = array<i32>} : memref<64x16xf32, #tpu.memory_space<vmem>>, vector<16x16xf32>,
    %c0_123 = arith.constant 0 : index
    %c0_124 = arith.constant 0 : index
    %376 = vector.load %arg3[%c0_123, %c0_124] : memref<128x64xf32, #tpu.memory_space<vmem>>, vector<128x64xf32>
    %c0_125 = arith.constant 0 : index
    %c0_126 = arith.constant 0 : index
    %377 = vector.load %arg7[%c0_125, %c0_126] : memref<64x16xf32, #tpu.memory_space<vmem>>, vector<64x16xf32>
    %cst_127 = arith.constant dense<0.000000e+00> : vector<128x16xf32>
    %378 = tpu.matmul %376, %377, %cst_127 {dimension_numbers = #tpu.dot_dimension_numbers<[1], [0], [0], [1], [0, 0, 1, 1], [], []>} : vector<128x64xf32>, vector<64x16xf32>, vector<128x16xf32> -> vector<128x16xf32>
    %c0_128 = arith.constant 0 : index
    %c0_129 = arith.constant 0 : index
    %379 = vector.load %arg4[%c0_128, %c0_129] : memref<128x64xf32, #tpu.memory_space<vmem>>, vector<128x64xf32>
    %c0_130 = arith.constant 0 : index
    %c0_131 = arith.constant 0 : index
    %380 = vector.load %arg2[%c0_130, %c0_131] : memref<64x16xbf16, #tpu.memory_space<vmem>>, vector<64x16xbf16>
    %381 = arith.extf %380 : vector<64x16xbf16> to vector<64x16xf32>
    %cst_132 = arith.constant dense<0.000000e+00> : vector<128x16xf32>
    %382 = tpu.matmul %379, %381, %cst_132 {dimension_numbers = #tpu.dot_dimension_numbers<[1], [0], [0], [1], [0, 0, 1, 1], [], []>} : vector<128x64xf32>, vector<64x16xf32>, vector<128x16xf32> -> vector<128x16xf32>
    %383 = arith.addf %378, %382 : vector<128x16xf32>
    %c0_133 = arith.constant 0 : index
    %c0_134 = arith.constant 0 : index
    %384 = vector.load %arg5[%c0_133, %c0_134] : memref<128x1xf32, #tpu.memory_space<vmem>>, vector<128x1xf32>
    %385 = vector.broadcast %384 : vector<128x1xf32> to vector<128x16xf32>
    %386 = arith.addf %383, %385 : vector<128x16xf32>
    %cst_135 = arith.constant 0.000000e+00 : f32
    %387 = vector.broadcast %cst_135 : f32 to vector<128x16xf32>
    %388 = arith.maximumf %386, %387 : vector<128x16xf32>
    %c0_136 = arith.constant 0 : index
    %c0_137 = arith.constant 0 : index
    %389 = vector.load %arg6[%c0_136, %c0_137] : memref<128x16xf32, #tpu.memory_space<vmem>>, vector<128x16xf32>
    tpu.vector_store %arg6[%c0_136, %c0_137], %388 {strides = array<i32>} : memref<128x16xf32, #tpu.memory_space<vmem>>, vector<128x16xf32>,
    return
  }
  func.func @transform_0(%arg0: i32) -> (i32, i32, i32) {
    %c0_i32 = arith.constant 0 : i32
    %c0_i32_0 = arith.constant 0 : i32
    %c0_i32_1 = arith.constant 0 : i32
    return %c0_i32, %c0_i32_0, %arg0 : i32, i32, i32
  }
  func.func @transform_1(%arg0: i32) -> (i32, i32) {
    %c0_i32 = arith.constant 0 : i32
    %c0_i32_0 = arith.constant 0 : i32
    return %c0_i32, %arg0 : i32, i32
  }
  func.func @transform_2(%arg0: i32) -> (i32, i32) {
    %c0_i32 = arith.constant 0 : i32
    %c0_i32_0 = arith.constant 0 : i32
    %c0_i32_1 = arith.constant 0 : i32
    return %c0_i32, %c0_i32_0 : i32, i32
  }
  func.func @transform_3(%arg0: i32) -> (i32, i32) {
    %c0_i32 = arith.constant 0 : i32
    %c0_i32_0 = arith.constant 0 : i32
    %c0_i32_1 = arith.constant 0 : i32
    return %c0_i32, %c0_i32_0 : i32, i32
  }
  func.func @transform_4(%arg0: i32) -> (i32, i32) {
    %c0_i32 = arith.constant 0 : i32
    %c0_i32_0 = arith.constant 0 : i32
    %c0_i32_1 = arith.constant 0 : i32
    return %c0_i32, %c0_i32_0 : i32, i32
  }
  func.func @transform_5(%arg0: i32) -> (i32, i32) {
    %c0_i32 = arith.constant 0 : i32
    %c0_i32_0 = arith.constant 0 : i32
    return %c0_i32, %arg0 : i32, i32
  }
}

</mosaic_0001>

<bundles_post_ra>
// kernel: tpu_custom_call.1
= control target key start
LH: loop header
LB: loop body
LE: loop exit
PB: predicated region body
PF: predicated region fallthrough
CT: control target
= control target key end

     0   :  { %v26_v0 = vlaneseq  ;;  %vm740_vm0 = vcmask 523264   ;;  %vm675_vm1 = vcmask 130048   ;;  %s2569_s1 = inlined_call_operand.vmem [shape: bf16[64,16], index: 1, kind: input, shape index: {}]   ;;  %s2570_s0 = inlined_call_operand.vmem [shape: bf16[16,16,16], index: 0, kind: input, shape index: {}]   ;;  %s2571_s3 = inlined_call_operand.vmem [shape: f32[128,64], index: 3, kind: input, shape index: {}]   ;;  %s2572_s2 = inlined_call_operand.vmem [shape: f32[128,64], index: 2, kind: input, shape index: {}]   ;;  %s2573_s4 = inlined_call_operand.vmem [shape: f32[128,1], index: 4, kind: input, shape index: {}]   ;;  %s2574_s5 = inlined_call_operand.vmem [shape: f32[128,16], index: 5, kind: output, shape index: {}]  }
   0x1   :  { %v1434_v1 = vld [vmem:[%s2569_s1 + $0x18] sm:$0xff]   ;;  %v1603_v2 = vld [vmem:[%s2570_s0] sm:$0xff]   ;;  %v1611_v7 = vld [vmem:[%s2570_s0 + $0x8] sm:$0xff]  }
   0x2   :  { %v54_v3 = vld [vmem:[%s2569_s1 + $0x18] sm:$0x1]  ;;  %v1415_v4 = vunpack.c.l.bf16 %v1434_v1  ;;  %v1416_v5 = vunpack.c.h.bf16 %v1434_v1  ;;  %v27_v6 = vshrl.u32 %v26_v0, 7  ;;  %v1616_v8 = vld [vmem:[%s2570_s0 + $0x10] sm:$0xff]   ;;  %v136_v9 = vld [vmem:[%s2569_s1 + $0x18] sm:$0x2]  ;;  %v1622_v10 = vunpack.c.h.bf16 %v1603_v2 }
   0x3   :  { %v55_v11 = vunpack.c.l.bf16 %v54_v3  ;;  %v1625_v12 = vunpack.c.h.bf16 %v1611_v7  ;;  %v137_v13 = vunpack.c.l.bf16 %v136_v9  ;;  %v1630_v14 = vld [vmem:[%s2570_s0 + $0x18] sm:$0xff]   ;;  %v1640_v18 = vunpack.c.h.bf16 %v1616_v8  ;;  %v1647_v20 = vld [vmem:[%s2570_s0 + $0x20] sm:$0xff]   ;;  %v1668_v28 = vld [vmem:[%s2570_s0 + $0x28] sm:$0xff]  }
   0x4   :  { %v218_v15 = vld [vmem:[%s2569_s1 + $0x18] sm:$0x4]  ;;  %1483 = vmatprep.subr.mxu0 %v1416_v5  ;;  %v1635_v16 = vsub.s32 0, %v27_v6  ;;  %v1637_v17 = vsub.s32 1, %v27_v6  ;;  %v1642_v19 = vsub.s32 2, %v27_v6  ;;  %v1649_v21 = vsub.s32 3, %v27_v6 }
   0x5   :  { %1484 = vmatpush3.msra.mxu0 %v1416_v5  ;;  %v1651_v22 = vsub.s32 4, %v27_v6  ;;  %v219_v23 = vunpack.c.l.bf16 %v218_v15  ;;  %v1663_v27 = vunpack.c.h.bf16 %v1630_v14  ;;  %v300_v29 = vld [vmem:[%s2569_s1 + $0x18] sm:$0x8]  ;;  %v1677_v31 = vunpack.c.h.bf16 %v1647_v20  ;;  %v1693_v37 = vld [vmem:[%s2570_s0 + $0x30] sm:$0xff]   ;;  %v382_v39 = vld [vmem:[%s2569_s1 + $0x1c] sm:$0x1] }
   0x6   :  { %1485 = vmatprep.subr.mxu0 %v1415_v4  ;;  %v1654_v24 = vrot.slane %v55_v11, %v1635_v16  ;;  %v1657_v25 = vrot.slane %v55_v11, %v1637_v17  ;;  %v1660_v26 = vrot.slane %v137_v13, %v1642_v19  ;;  %v1674_v30 = vrot.slane %v137_v13, %v1649_v21  ;;  %v464_v42 = vld [vmem:[%s2569_s1 + $0x1c] sm:$0x2]  ;;  %v1724_v49 = vld [vmem:[%s2570_s0 + $0x40] sm:$0xff]   ;;  %v1734_v54 = vld [vmem:[%s2570_s0 + $0x48] sm:$0xff]  }
   0x7   :  { %2616 = vst [vmem:[#allocation3_spill] sm:$0xff] %v1677_v31  ;;  %v1680_v32 = vrot.slane %v219_v23, %v1651_v22  ;;  %v1682_v33 = vsub.s32 5, %v27_v6  ;;  %1486 = vmatpush3.msra.mxu0 %v1415_v4  ;;  %v1695_v38 = vsub.s32 6, %v27_v6  ;;  %v1701_v40 = vunpack.c.h.bf16 %v1668_v28  ;;  %v1714_v46 = vld [vmem:[%s2570_s0 + $0x38] sm:$0xff]   ;;  %v1739_v55 = vld [vmem:[%s2570_s0 + $0x50] sm:$0xff]   ;;  %v1785_v13 = vld [vmem:[%s2570_s0 + $0x60] sm:$0xff]  }
   0x8   :  { %v61_v34 = vmul.f32 %v1622_v10, %v1654_v24  ;;  %v98_v35 = vmul.f32 %v1625_v12, %v1657_v25  ;;  %v143_v36 = vmul.f32 %v1640_v18, %v1660_v26  ;;  %v301_v41 = vunpack.c.l.bf16 %v300_v29  ;;  %v1758_v63 = vld [vmem:[%s2570_s0 + $0x58] sm:$0xff]  }
   0x9   :  { %2617 = vst [vmem:[#allocation4_spill] sm:$0xff] %v1701_v40  ;;  %v180_v44 = vmul.f32 %v1663_v27, %v1674_v30  ;;  %v1709_v45 = vrot.slane %v219_v23, %v1682_v33  ;;  %v1716_v47 = vsub.s32 7, %v27_v6  ;;  %v1719_v48 = vunpack.c.h.bf16 %v1693_v37  ;;  %v546_v0 = vld [vmem:[%s2569_s1 + $0x1c] sm:$0x4]  ;;  %v1778_v6 = vld [vmem:[%s2569_s1 + $0x10] sm:$0xff]  }
   0xa   :  { %v100_v43 = vadd.f32 %v98_v35, %v61_v34  ;;  %v383_v50 = vunpack.c.l.bf16 %v382_v39  ;;  %v225_v52 = vmul.f32 %v1677_v31, %v1680_v32  ;;  %v1729_v53 = vrot.slane %v301_v41, %v1695_v38  ;;  %v628_v15 = vld [vmem:[%s2569_s1 + $0x1c] sm:$0x8] }
   0xb   :  { %2618 = vst [vmem:[#allocation5_spill] sm:$0xff] %v1719_v48  ;;  %v465_v56 = vunpack.c.l.bf16 %v464_v42  ;;  %v1742_v57 = vunpack.c.h.bf16 %v1714_v46  ;;  %v1745_v58 = vrot.slane %v301_v41, %v1716_v47  ;;  %v262_v60 = vmul.f32 %v1701_v40, %v1709_v45  ;;  %v1803_v41 = vld [vmem:[%s2570_s0 + $0x68] sm:$0xff]  }
   0xc   :  { %v145_v51 = vadd.f32 %v143_v36, %v100_v43  ;;  %v1750_v61 = vunpack.c.h.bf16 %v1724_v49  ;;  %v1753_v62 = vrot.slane %v383_v50, %v1635_v16  ;;  %v1764_v1 = vunpack.c.h.bf16 %v1734_v54 }
   0xd   :  { %2619 = vst [vmem:[#allocation6_spill] sm:$0xff] %v1742_v57  ;;  %v1767_v3 = vrot.slane %v383_v50, %v1637_v17  ;;  %v1770_v4 = vunpack.c.h.bf16 %v1739_v55  ;;  %v1773_v5 = vrot.slane %v465_v56, %v1642_v19  ;;  %v307_v11 = vmul.f32 %v1719_v48, %v1729_v53 }
   0xe   :  { %v182_v59 = vadd.f32 %v180_v44, %v145_v51  ;;  %2620 = vst [vmem:[#allocation7_spill] sm:$0xff] %v1750_v61  ;;  %2621 = vst [vmem:[#allocation8_spill] sm:$0xff] %v1764_v1  ;;  %v344_v23 = vmul.f32 %v1742_v57, %v1745_v58  ;;  %v1793_v29 = vunpack.c.h.bf16 %v1758_v63  ;;  %v1796_v34 = vrot.slane %v465_v56, %v1649_v21  ;;  %v708_v44 = vld [vmem:[%s2571_s3] sm:$0xff] }
   0xf   :  { %2622 = vst [vmem:[#allocation9_spill] sm:$0xff] %v1770_v4  ;;  %v547_v35 = vunpack.c.l.bf16 %v546_v0  ;;  %v389_v39 = vmul.f32 %v1750_v61, %v1753_v62  ;;  %v1412_v42 = vunpack.c.h.bf16 %v1778_v6  ;;  %v1807_v43 = vunpack.c.l.bf16 %v1603_v2  ;;  %1499 = vmatprep.mubr.msk.f32.mxu0 %vm740_vm0, %v708_v44  ;;  %v684_v2 = vld [vmem:[%s2572_s2] sm:$0xff]  ;;  %v1831_v0 = vld [vmem:[%s2570_s0 + $0x78] sm:$0xff]  }
  0x10   :  { %v227_v9 = vadd.f32 %v225_v52, %v182_v59  ;;  %2623 = vst [vmem:[#allocation10_spill] sm:$0xff] %v1793_v29  ;;  %v426_v50 = vmul.f32 %v1764_v1, %v1767_v3  ;;  %v471_v51 = vmul.f32 %v1770_v4, %v1773_v5  ;;  %v1817_v52 = vunpack.c.h.bf16 %v1785_v13  ;;  %1539 = vmatprep.mubr.msk.f32.mxu1 %vm740_vm0, %v684_v2 }
  0x11   :  { %v629_v56 = vunpack.c.l.bf16 %v628_v15  ;;  %1487 = vmatprep.subr.mxu0 %v1412_v42  ;;  %v1836_v15 = vunpack.c.l.bf16 %v1611_v7  ;;  %v1839_v44 = vunpack.c.l.bf16 %v1616_v8  ;;  %v1849_v4 = vrot.slane %v547_v35, %v1682_v33 }
  0x12   :  { %v264_v36 = vadd.f32 %v262_v60, %v227_v9  ;;  %2624 = vst [vmem:[#allocation11_spill] sm:$0xff] %v1817_v52  ;;  %v1826_v60 = vld [vmem:[%s2570_s0 + $0x70] sm:$0xff]   ;;  %v60_v9 = vmul.f32 %v1807_v43, %v1654_v24  ;;  %v1852_v1 = vunpack.c.l.bf16 %v1630_v14  ;;  %1488 = vmatpush3.msra.mxu0 %v1412_v42  ;;  %v1859_v2 = vunpack.c.l.bf16 %v1647_v20 }
  0x13   :  { %2625 = vst [vmem:[#allocation12_spill] sm:$0xff] %v1836_v15  ;;  %2626 = vst [vmem:[#allocation13_spill] sm:$0xff] %v1839_v44  ;;  %v97_v8 = vmul.f32 %v1836_v15, %v1657_v25  ;;  %v142_v24 = vmul.f32 %v1839_v44, %v1660_v26  ;;  %v1862_v61 = vunpack.c.h.bf16 %v1826_v60  ;;  %v1868_v14 = vunpack.c.h.bf16 %v1831_v0 }
  0x14   :  { %v309_v59 = vadd.f32 %v307_v11, %v264_v36  ;;  %v1843_v11 = vrot.slane %v547_v35, %v1651_v22  ;;  %v1846_v36 = vunpack.c.h.bf16 %v1803_v41  ;;  %2628 = vst [vmem:[#allocation15_spill] sm:$0xff] %v1859_v2  ;;  %v1865_v35 = vrot.slane %v629_v56, %v1695_v38 }
  0x15   :  { %2629 = vst [vmem:[#allocation16_spill] sm:$0xff] %v1862_v61  ;;  %2630 = vst [vmem:[#allocation17_spill] sm:$0xff] %v1868_v14  ;;  %v99_v25 = vadd.f32 %v97_v8, %v60_v9  ;;  %v179_v26 = vmul.f32 %v1852_v1, %v1674_v30  ;;  %v1876_v20 = vunpack.c.l.bf16 %v1668_v28  ;;  %v1881_v44 = vunpack.c.l.bf16 %v1693_v37 }
  0x16   :  { %2627 = vst [vmem:[#allocation14_spill] sm:$0xff] %v1846_v36  ;;  %v346_v7 = vadd.f32 %v344_v23, %v309_v59  ;;  %v1871_v23 = vrot.slane %v629_v56, %v1716_v47  ;;  %v508_v59 = vmul.f32 %v1793_v29, %v1796_v34  ;;  %v1884_v15 = vunpack.c.l.bf16 %v1714_v46 }
  0x17   :  { %2631 = vst [vmem:[#allocation18_spill] sm:$0xff] %v1876_v20  ;;  %v1887_v56 = vunpack.c.l.bf16 %v1724_v49  ;;  %v553_v9 = vmul.f32 %v1817_v52, %v1843_v11  ;;  %v144_v30 = vadd.f32 %v142_v24, %v99_v25  ;;  %v224_v28 = vmul.f32 %v1859_v2, %v1680_v32 }
  0x18   :  { %v391_v42 = vadd.f32 %v389_v39, %v346_v7  ;;  %v590_v7 = vmul.f32 %v1846_v36, %v1849_v4  ;;  %v635_v37 = vmul.f32 %v1862_v61, %v1865_v35  ;;  %v1898_v46 = vunpack.c.l.bf16 %v1734_v54  ;;  %v126_v54 = vld [vmem:[%s2569_s1 + $0x10] sm:$0x2] }
  0x19   :  { %2632 = vst [vmem:[#allocation19_spill] sm:$0xff] %v1887_v56  ;;  %v1901_v49 = vunpack.c.l.bf16 %v1739_v55  ;;  %v672_v32 = vmul.f32 %v1868_v14, %v1871_v23  ;;  %v181_v24 = vadd.f32 %v179_v26, %v144_v30  ;;  %v208_v55 = vld [vmem:[%s2569_s1 + $0x10] sm:$0x4]  ;;  %v306_v25 = vmul.f32 %v1881_v44, %v1729_v53 }
  0x1a   :  { %v428_v39 = vadd.f32 %v426_v50, %v391_v42  ;;  %2633 = vst [vmem:[#allocation20_spill] sm:$0xff] %v1898_v46  ;;  %v44_v50 = vld [vmem:[%s2569_s1 + $0x10] sm:$0x1]  ;;  %v261_v42 = vmul.f32 %v1876_v20, %v1709_v45  ;;  %v388_v26 = vmul.f32 %v1887_v56, %v1753_v62  ;;  %v1411_v45 = vunpack.c.l.bf16 %v1778_v6  ;;  %v290_v20 = vld [vmem:[%s2569_s1 + $0x10] sm:$0x8] }
  0x1b   :  { %v226_v30 = vadd.f32 %v224_v28, %v181_v24  ;;  %v1924_v14 = vunpack.c.l.bf16 %v1758_v63  ;;  %v45_v61 = vunpack.c.l.bf16 %v44_v50  ;;  %v425_v53 = vmul.f32 %v1898_v46, %v1767_v3 }
  0x1c   :  { %v473_v8 = vadd.f32 %v471_v51, %v428_v39  ;;  %v343_v51 = vmul.f32 %v1884_v15, %v1745_v58  ;;  %v470_v58 = vmul.f32 %v1901_v49, %v1773_v5  ;;  %1489 = vmatprep.subr.mxu0 %v1411_v45  ;;  %v127_v62 = vunpack.c.l.bf16 %v126_v54 }
  0x1d   :  { %2634 = vst [vmem:[#allocation21_spill] sm:$0xff] %v1924_v14  ;;  %v209_v56 = vunpack.c.l.bf16 %v208_v55  ;;  %v49_v28 = vrot.slane %v45_v61, %v1635_v16  ;;  %v88_v63 = vrot.slane %v45_v61, %v1637_v17  ;;  %1490 = vmatpush3.msra.mxu0 %v1411_v45  ;;  %v291_v3 = vunpack.c.l.bf16 %v290_v20 }
  0x1e   :  { %v510_v39 = vadd.f32 %v508_v59, %v473_v8  ;;  %v263_v59 = vadd.f32 %v261_v42, %v226_v30  ;;  %v131_v50 = vrot.slane %v127_v62, %v1642_v19  ;;  %v170_v8 = vrot.slane %v127_v62, %v1649_v21  ;;  %v372_v42 = vld [vmem:[%s2569_s1 + $0x14] sm:$0x1]  ;;  %v454_v62 = vld [vmem:[%s2569_s1 + $0x14] sm:$0x2] }
  0x1f   :  { %v1938_v24 = vrot.slane %v209_v56, %v1651_v22  ;;  %v51_v54 = vmul.f32 %v1622_v10, %v49_v28  ;;  %v1946_v61 = vunpack.c.l.bf16 %v1785_v13  ;;  %v1949_v55 = vunpack.c.l.bf16 %v1803_v41 }
  0x20   :  { %v555_v6 = vadd.f32 %v553_v9, %v510_v39  ;;  %v308_v5 = vadd.f32 %v306_v25, %v263_v59  ;;  %v90_v9 = vmul.f32 %v1625_v12, %v88_v63  ;;  %v133_v45 = vmul.f32 %v1640_v18, %v131_v50 }
  0x21   :  { %2635 = vst [vmem:[#allocation22_spill] sm:$0xff] %v1949_v55  ;;  %v1953_v20 = vrot.slane %v209_v56, %v1682_v33  ;;  %v172_v30 = vmul.f32 %v1663_v27, %v170_v8  ;;  %v1960_v13 = vunpack.c.l.bf16 %v1826_v60  ;;  %v215_v41 = vmul.f32 %v1677_v31, %v1938_v24 }
  0x22   :  { %v592_v46 = vadd.f32 %v590_v7, %v555_v6  ;;  %v345_v25 = vadd.f32 %v343_v51, %v308_v5  ;;  %v92_v39 = vadd.f32 %v90_v9, %v51_v54  ;;  %v1965_v6 = vrot.slane %v291_v3, %v1695_v38  ;;  %v536_v5 = vld [vmem:[%s2569_s1 + $0x14] sm:$0x4] }
  0x23   :  { %2636 = vst [vmem:[#allocation23_spill] sm:$0xff] %v1960_v13  ;;  %v373_v56 = vunpack.c.l.bf16 %v372_v42  ;;  %v1968_v51 = vrot.slane %v291_v3, %v1716_v47  ;;  %v507_v60 = vmul.f32 %v1924_v14, %v1796_v34  ;;  %v552_v54 = vmul.f32 %v1946_v61, %v1843_v11  ;;  %v618_v34 = vld [vmem:[%s2569_s1 + $0x14] sm:$0x8]  ;;  %v1991_v11 = vld [vmem:[%s2569_s1 + $0x8] sm:$0xff]  }
  0x24   :  { %v637_v7 = vadd.f32 %v635_v37, %v592_v46  ;;  %v390_v37 = vadd.f32 %v388_v26, %v345_v25  ;;  %v135_v46 = vadd.f32 %v133_v45, %v92_v39  ;;  %v589_v9 = vmul.f32 %v1949_v55, %v1849_v4  ;;  %v2637_v55 = vld [vmem:[#allocation12_spill] sm:$0xff] }
  0x25   :  { %v455_v42 = vunpack.c.l.bf16 %v454_v62  ;;  %v1981_v26 = vunpack.c.l.bf16 %v1831_v0  ;;  %v254_v45 = vmul.f32 %v1701_v40, %v1953_v20  ;;  %v634_v4 = vmul.f32 %v1960_v13, %v1865_v35 }
  0x26   :  { %v674_v59 = vadd.f32 %v672_v32, %v637_v7  ;;  %v427_v32 = vadd.f32 %v425_v53, %v390_v37  ;;  %v174_v3 = vadd.f32 %v172_v30, %v135_v46  ;;  %v297_v0 = vmul.f32 %v1719_v48, %v1965_v6 }
  0x27   :  { %v1998_v53 = vrot.slane %v373_v56, %v1635_v16  ;;  %v537_v7 = vunpack.c.l.bf16 %v536_v5  ;;  %v336_v30 = vmul.f32 %v1742_v57, %v1968_v51  ;;  %v2003_v62 = vrot.slane %v373_v56, %v1637_v17 }
  0x28   :  { %683 = vst.msk [vmem:[#allocation2 + $0x38] sm:$0xff] %vm675_vm1, %v674_v59  ;;  %v472_v25 = vadd.f32 %v470_v58, %v427_v32  ;;  %v217_v39 = vadd.f32 %v215_v41, %v174_v3  ;;  %v2006_v59 = vrot.slane %v455_v42, %v1642_v19  ;;  %v619_v37 = vunpack.c.l.bf16 %v618_v34  ;;  %v2638_v58 = vld [vmem:[#allocation13_spill] sm:$0xff]  ;;  %v2639_v32 = vld [vmem:[#allocation7_spill] sm:$0xff] }
  0x29   :  { %v1408_v35 = vunpack.c.h.bf16 %v1991_v11  ;;  %v50_v46 = vmul.f32 %v1807_v43, %v49_v28  ;;  %v89_v5 = vmul.f32 %v2637_v55, %v88_v63  ;;  %v132_v41 = vmul.f32 %v2638_v58, %v131_v50 }
  0x2a   :  { %v509_v48 = vadd.f32 %v507_v60, %v472_v25  ;;  %v256_v13 = vadd.f32 %v254_v45, %v217_v39  ;;  %v379_v3 = vmul.f32 %v2639_v32, %v1998_v53  ;;  %v2015_v56 = vrot.slane %v455_v42, %v1649_v21  ;;  %v2640_v42 = vld [vmem:[#allocation8_spill] sm:$0xff]  ;;  %v2641_v32 = vld [vmem:[#allocation9_spill] sm:$0xff] }
  0x2b   :  { %v2018_v57 = vrot.slane %v537_v7, %v1651_v22  ;;  %v2021_v34 = vrot.slane %v537_v7, %v1682_v33  ;;  %1491 = vmatprep.subr.mxu0 %v1408_v35  ;;  %v91_v45 = vadd.f32 %v89_v5, %v50_v46  ;;  %v171_v63 = vmul.f32 %v1852_v1, %v170_v8 }
  0x2c   :  { %v554_v28 = vadd.f32 %v552_v54, %v509_v48  ;;  %v299_v60 = vadd.f32 %v297_v0, %v256_v13  ;;  %1492 = vmatpush3.msra.mxu0 %v1408_v35  ;;  %v671_v25 = vmul.f32 %v1981_v26, %v1871_v23  ;;  %v418_v39 = vmul.f32 %v2640_v42, %v2003_v62  ;;  %v34_v23 = vld [vmem:[%s2569_s1 + $0x8] sm:$0x1] }
  0x2d   :  { %v461_v58 = vmul.f32 %v2641_v32, %v2006_v59  ;;  %v2031_v7 = vrot.slane %v619_v37, %v1695_v38  ;;  %v134_v54 = vadd.f32 %v132_v41, %v91_v45  ;;  %v214_v8 = vmul.f32 %v1859_v2, %v1938_v24  ;;  %v116_v24 = vld [vmem:[%s2569_s1 + $0x8] sm:$0x2]  ;;  %v198_v45 = vld [vmem:[%s2569_s1 + $0x8] sm:$0x4] }
  0x2e   :  { %v591_v48 = vadd.f32 %v589_v9, %v554_v28  ;;  %v338_v13 = vadd.f32 %v336_v30, %v299_v60  ;;  %v500_v0 = vmul.f32 %v1793_v29, %v2015_v56  ;;  %v543_v35 = vmul.f32 %v1817_v52, %v2018_v57  ;;  %v2642_v28 = vld [vmem:[#allocation18_spill] sm:$0xff] }
  0x2f   :  { %v707_v50 = vld [vmem:[#allocation2 + $0x38] sm:$0xff]  ;;  %v582_v46 = vmul.f32 %v1846_v36, %v2021_v34  ;;  %v2045_v9 = vrot.slane %v619_v37, %v1716_v47  ;;  %v173_v41 = vadd.f32 %v171_v63, %v134_v54  ;;  %v253_v60 = vmul.f32 %v2642_v28, %v1953_v20  ;;  %v280_v20 = vld [vmem:[%s2569_s1 + $0x8] sm:$0x8] }
  0x30   :  { %1523 = vmatprep.subr.mxu1 %v707_v50  ;;  %v636_v30 = vadd.f32 %v634_v4, %v591_v48  ;;  %v381_v5 = vadd.f32 %v379_v3, %v338_v13  ;;  %v296_v37 = vmul.f32 %v1881_v44, %v1965_v6  ;;  %v1407_v52 = vunpack.c.l.bf16 %v1991_v11 }
  0x31   :  { %1524 = vmatpush3.msra.mxu1 %v707_v50  ;;  %v2643_v50 = vld [vmem:[#allocation16_spill] sm:$0xff]  ;;  %v35_v29 = vunpack.c.l.bf16 %v34_v23  ;;  %v216_v3 = vadd.f32 %v214_v8, %v173_v41  ;;  %v117_v63 = vunpack.c.l.bf16 %v116_v24  ;;  %v335_v48 = vmul.f32 %v1884_v15, %v1968_v51 }
  0x32   :  { %v625_v36 = vmul.f32 %v2643_v50, %v2031_v7  ;;  %v673_v2 = vadd.f32 %v671_v25, %v636_v30  ;;  %v420_v4 = vadd.f32 %v418_v39, %v381_v5  ;;  %1493 = vmatprep.subr.mxu0 %v1407_v52  ;;  %v199_v6 = vunpack.c.l.bf16 %v198_v45 }
  0x33   :  { %v39_v13 = vrot.slane %v35_v29, %v1635_v16  ;;  %v2067_v54 = vrot.slane %v35_v29, %v1637_v17  ;;  %v255_v25 = vadd.f32 %v253_v60, %v216_v3  ;;  %v121_v39 = vrot.slane %v117_v63, %v1642_v19  ;;  %1494 = vmatpush3.msra.mxu0 %v1407_v52  ;;  %v362_v52 = vld [vmem:[%s2569_s1 + $0xc] sm:$0x1]  ;;  %v2645_v60 = vld [vmem:[#allocation17_spill] sm:$0xff] }
  0x34   :  { %682 = vst.msk [vmem:[#allocation2 + $0x30] sm:$0xff] %vm675_vm1, %v673_v2  ;;  %v463_v11 = vadd.f32 %v461_v58, %v420_v4  ;;  %v2072_v8 = vrot.slane %v117_v63, %v1649_v21  ;;  %v2078_v24 = vrot.slane %v199_v6, %v1651_v22  ;;  %v281_v29 = vunpack.c.l.bf16 %v280_v20  ;;  %v2644_v2 = vld [vmem:[#allocation19_spill] sm:$0xff] }
  0x35   :  { %v41_v23 = vmul.f32 %v1622_v10, %v39_v13  ;;  %v82_v51 = vmul.f32 %v1625_v12, %v2067_v54  ;;  %v298_v5 = vadd.f32 %v296_v37, %v255_v25  ;;  %v378_v58 = vmul.f32 %v2644_v2, %v1998_v53  ;;  %v2646_v53 = vld [vmem:[#allocation20_spill] sm:$0xff] }
  0x36   :  { %v502_v30 = vadd.f32 %v500_v0, %v463_v11  ;;  %v123_v41 = vmul.f32 %v1640_v18, %v121_v39  ;;  %v664_v45 = vmul.f32 %v2645_v60, %v2045_v9  ;;  %v164_v3 = vmul.f32 %v1663_v27, %v2072_v8  ;;  %v444_v25 = vld [vmem:[%s2569_s1 + $0xc] sm:$0x2] }
  0x37   :  { %v84_v4 = vadd.f32 %v82_v51, %v41_v23  ;;  %v2091_v63 = vrot.slane %v199_v6, %v1682_v33  ;;  %v337_v37 = vadd.f32 %v335_v48, %v298_v5  ;;  %v417_v20 = vmul.f32 %v2646_v53, %v2003_v62 }
  0x38   :  { %v545_v0 = vadd.f32 %v543_v35, %v502_v30  ;;  %v460_v11 = vmul.f32 %v1901_v49, %v2006_v59  ;;  %v205_v23 = vmul.f32 %v1677_v31, %v2078_v24  ;;  %v2103_v51 = vrot.slane %v281_v29, %v1695_v38  ;;  %v526_v59 = vld [vmem:[%s2569_s1 + $0xc] sm:$0x4] }
  0x39   :  { %v125_v60 = vadd.f32 %v123_v41, %v84_v4  ;;  %v363_v6 = vunpack.c.l.bf16 %v362_v52  ;;  %v380_v48 = vadd.f32 %v378_v58, %v337_v37  ;;  %v499_v62 = vmul.f32 %v1924_v14, %v2015_v56  ;;  %v2647_v56 = vld [vmem:[#allocation22_spill] sm:$0xff]  ;;  %v2648_v37 = vld [vmem:[#allocation23_spill] sm:$0xff] }
  0x3a   :  { %v584_v35 = vadd.f32 %v582_v46, %v545_v0  ;;  %v2108_v30 = vrot.slane %v281_v29, %v1716_v47  ;;  %v542_v41 = vmul.f32 %v1946_v61, %v2018_v57  ;;  %v246_v52 = vmul.f32 %v1701_v40, %v2091_v63  ;;  %v2124_v14 = vld [vmem:[%s2569_s1] sm:$0xff]  }
  0x3b   :  { %v706_v5 = vld [vmem:[#allocation2 + $0x30] sm:$0xff]  ;;  %v166_v4 = vadd.f32 %v164_v3, %v125_v60  ;;  %v445_v46 = vunpack.c.l.bf16 %v444_v25  ;;  %v419_v0 = vadd.f32 %v417_v20, %v380_v48  ;;  %v581_v29 = vmul.f32 %v2647_v56, %v2021_v34  ;;  %v2650_v34 = vld [vmem:[#allocation6_spill] sm:$0xff] }
  0x3c   :  { %1525 = vmatprep.subr.mxu1 %v706_v5  ;;  %v627_v58 = vadd.f32 %v625_v36, %v584_v35  ;;  %v624_v31 = vmul.f32 %v2648_v37, %v2031_v7  ;;  %v2649_v60 = vld [vmem:[#allocation5_spill] sm:$0xff]  ;;  %v367_v25 = vrot.slane %v363_v6, %v1635_v16  ;;  %v527_v36 = vunpack.c.l.bf16 %v526_v59 }
  0x3d   :  { %1526 = vmatpush3.msra.mxu1 %v706_v5  ;;  %v207_v57 = vadd.f32 %v205_v23, %v166_v4  ;;  %v287_v3 = vmul.f32 %v2649_v60, %v2103_v51  ;;  %v462_v35 = vadd.f32 %v460_v11, %v419_v0  ;;  %v328_v48 = vmul.f32 %v2650_v34, %v2108_v30  ;;  %v608_v23 = vld [vmem:[%s2569_s1 + $0xc] sm:$0x8]  ;;  %v2651_v4 = vld [vmem:[#allocation13_spill] sm:$0xff]  ;;  %v2652_v0 = vld [vmem:[#allocation7_spill] sm:$0xff] }
  0x3e   :  { %v666_v20 = vadd.f32 %v664_v45, %v627_v58  ;;  %v2132_v7 = vrot.slane %v363_v6, %v1637_v17  ;;  %v2135_v40 = vrot.slane %v445_v46, %v1642_v19  ;;  %v1404_v5 = vunpack.c.h.bf16 %v2124_v14 }
  0x3f   :  { %v248_v37 = vadd.f32 %v246_v52, %v207_v57  ;;  %v40_v59 = vmul.f32 %v1807_v43, %v39_v13  ;;  %v501_v45 = vadd.f32 %v499_v62, %v462_v35  ;;  %v2144_v11 = vrot.slane %v445_v46, %v1649_v21 }
  0x40   :  { %681 = vst.msk [vmem:[#allocation2 + $0x28] sm:$0xff] %vm675_vm1, %v666_v20  ;;  %v81_v6 = vmul.f32 %v2637_v55, %v2067_v54  ;;  %v122_v52 = vmul.f32 %v2651_v4, %v121_v39  ;;  %v369_v57 = vmul.f32 %v2652_v0, %v367_v25  ;;  %v2151_v34 = vrot.slane %v527_v36, %v1651_v22 }
  0x41   :  { %v289_v58 = vadd.f32 %v287_v3, %v248_v37  ;;  %v2154_v60 = vrot.slane %v527_v36, %v1682_v33  ;;  %1495 = vmatprep.subr.mxu0 %v1404_v5  ;;  %v544_v13 = vadd.f32 %v542_v41, %v501_v45  ;;  %v609_v62 = vunpack.c.l.bf16 %v608_v23  ;;  %v2653_v41 = vld [vmem:[#allocation15_spill] sm:$0xff]  ;;  %v2654_v45 = vld [vmem:[#allocation10_spill] sm:$0xff] }
  0x42   :  { %v83_v20 = vadd.f32 %v81_v6, %v40_v59  ;;  %v163_v46 = vmul.f32 %v1852_v1, %v2072_v8  ;;  %1496 = vmatpush3.msra.mxu0 %v1404_v5  ;;  %v663_v54 = vmul.f32 %v1981_v26, %v2045_v9  ;;  %v410_v37 = vmul.f32 %v2640_v42, %v2132_v7  ;;  %v2655_v5 = vld [vmem:[#allocation11_spill] sm:$0xff]  ;;  %v2656_v9 = vld [vmem:[#allocation14_spill] sm:$0xff] }
  0x43   :  { %v330_v39 = vadd.f32 %v328_v48, %v289_v58  ;;  %v583_v3 = vadd.f32 %v581_v29, %v544_v13  ;;  %v451_v36 = vmul.f32 %v2641_v32, %v2135_v40  ;;  %v204_v23 = vmul.f32 %v2653_v41, %v2078_v24  ;;  %v24_v29 = vld [vmem:[%s2569_s1] sm:$0x1] }
  0x44   :  { %v124_v35 = vadd.f32 %v122_v52, %v83_v20  ;;  %v492_v8 = vmul.f32 %v2654_v45, %v2144_v11  ;;  %v533_v6 = vmul.f32 %v2655_v5, %v2151_v34  ;;  %v574_v48 = vmul.f32 %v2656_v9, %v2154_v60  ;;  %v106_v52 = vld [vmem:[%s2569_s1] sm:$0x2]  ;;  %v188_v20 = vld [vmem:[%s2569_s1] sm:$0x4] }
  0x45   :  { %v371_v59 = vadd.f32 %v369_v57, %v330_v39  ;;  %v626_v58 = vadd.f32 %v624_v31, %v583_v3  ;;  %v2179_v24 = vrot.slane %v609_v62, %v1695_v38  ;;  %v245_v13 = vmul.f32 %v2642_v28, %v2091_v63  ;;  %v270_v63 = vld [vmem:[%s2569_s1] sm:$0x8] }
  0x46   :  { %v165_v57 = vadd.f32 %v163_v46, %v124_v35  ;;  %v2187_v5 = vrot.slane %v609_v62, %v1716_v47  ;;  %v286_v45 = vmul.f32 %v1881_v44, %v2103_v51  ;;  %v1403_v31 = vunpack.c.l.bf16 %v2124_v14 }
  0x47   :  { %v705_v39 = vld [vmem:[#allocation2 + $0x28] sm:$0xff]  ;;  %v412_v9 = vadd.f32 %v410_v37, %v371_v59  ;;  %v665_v3 = vadd.f32 %v663_v54, %v626_v58  ;;  %v25_v35 = vunpack.c.l.bf16 %v24_v29  ;;  %v107_v32 = vunpack.c.l.bf16 %v106_v52 }
  0x48   :  { %1527 = vmatprep.subr.mxu1 %v705_v39  ;;  %v206_v46 = vadd.f32 %v204_v23, %v165_v57  ;;  %v709_v37 = vld [vmem:[%s2571_s3 + $0x8] sm:$0xff]  ;;  %v327_v51 = vmul.f32 %v1884_v15, %v2108_v30  ;;  %v368_v14 = vmul.f32 %v2644_v2, %v367_v25  ;;  %1497 = vmatprep.subr.mxu0 %v1403_v31  ;;  %v189_v54 = vunpack.c.l.bf16 %v188_v20  ;;  %v710_v23 = vld [vmem:[%s2571_s3 + $0x10] sm:$0xff] }
  0x49   :  { %1528 = vmatpush3.msra.mxu1 %v705_v39  ;;  %v453_v62 = vadd.f32 %v451_v36, %v412_v9  ;;  %680 = vst.msk [vmem:[#allocation2 + $0x20] sm:$0xff] %vm675_vm1, %v665_v3  ;;  %v29_v29 = vrot.slane %v25_v35, %v1635_v16  ;;  %v2207_v52 = vrot.slane %v25_v35, %v1637_v17  ;;  %v271_v58 = vunpack.c.l.bf16 %v270_v63  ;;  %v712_v3 = vld [vmem:[%s2571_s3 + $0x20] sm:$0xff] }
  0x4a   :  { %v247_v59 = vadd.f32 %v245_v13, %v206_v46  ;;  %v2210_v36 = vrot.slane %v107_v32, %v1642_v19  ;;  %1498 = vmatpush3.msra.mxu0 %v1403_v31  ;;  %v2213_v25 = vrot.slane %v107_v32, %v1649_v21  ;;  %v2216_v9 = vrot.slane %v189_v54, %v1651_v22  ;;  %v352_v32 = vld [vmem:[%s2569_s1 + $0x4] sm:$0x1] }
  0x4b   :  { %v494_v30 = vadd.f32 %v492_v8, %v453_v62  ;;  %1500 = vmatmul.mubr.msk.f32.vlgmr.msra.gmra.mxu0 %vm740_vm0, %v709_v37  ;;  %v31_v13 = vmul.f32 %v1622_v10, %v29_v29  ;;  %v74_v20 = vmul.f32 %v1625_v12, %v2207_v52  ;;  %v711_v8 = vld [vmem:[%s2571_s3 + $0x18] sm:$0xff]  ;;  %v615_v10 = vmul.f32 %v2643_v50, %v2179_v24  ;;  %v434_v37 = vld [vmem:[%s2569_s1 + $0x4] sm:$0x2] }
  0x4c   :  { %v288_v57 = vadd.f32 %v286_v45, %v247_v59  ;;  %v113_v39 = vmul.f32 %v1640_v18, %v2210_v36  ;;  %1502 = vmatprep.mubr.msk.f32.mxu0 %vm740_vm0, %v710_v23  ;;  %v2657_v45 = vld [vmem:[#allocation17_spill] sm:$0xff]  ;;  %v409_v18 = vmul.f32 %v2646_v53, %v2132_v7  ;;  %v156_v63 = vmul.f32 %v1663_v27, %v2213_v25  ;;  %v2659_v27 = vld [vmem:[#allocation3_spill] sm:$0xff] }
  0x4d   :  { %v535_v31 = vadd.f32 %v533_v6, %v494_v30  ;;  %v656_v12 = vmul.f32 %v2657_v45, %v2187_v5  ;;  %v76_v35 = vadd.f32 %v74_v20, %v31_v13  ;;  %v2243_v6 = vrot.slane %v189_v54, %v1682_v33  ;;  %v2658_v23 = vld [vmem:[#allocation21_spill] sm:$0xff] }
  0x4e   :  { %v329_v46 = vadd.f32 %v327_v51, %v288_v57  ;;  %v450_v7 = vmul.f32 %v1901_v49, %v2135_v40  ;;  %v491_v59 = vmul.f32 %v2658_v23, %v2144_v11  ;;  %v353_v30 = vunpack.c.l.bf16 %v352_v32  ;;  %v713_v40 = vld [vmem:[%s2571_s3 + $0x28] sm:$0xff]  ;;  %v714_v32 = vld [vmem:[%s2571_s3 + $0x30] sm:$0xff] }
  0x4f   :  { %v576_v62 = vadd.f32 %v574_v48, %v535_v31  ;;  %1503 = vmatmul.mubr.msk.f32.gmra.mxu0 %vm740_vm0, %v711_v8  ;;  %v115_v57 = vadd.f32 %v113_v39, %v76_v35  ;;  %v195_v54 = vmul.f32 %v2659_v27, %v2216_v9  ;;  %v2256_v13 = vrot.slane %v271_v58, %v1695_v38 }
  0x50   :  { %v370_v51 = vadd.f32 %v368_v14, %v329_v46  ;;  %1505 = vmatprep.mubr.msk.f32.mxu0 %vm740_vm0, %v712_v3  ;;  %v704_v48 = vld [vmem:[#allocation2 + $0x20] sm:$0xff]  ;;  %v532_v11 = vmul.f32 %v1946_v61, %v2151_v34  ;;  %v2265_v14 = vrot.slane %v271_v58, %v1716_v47  ;;  %v435_v39 = vunpack.c.l.bf16 %v434_v37  ;;  %v2660_v46 = vld [vmem:[#allocation4_spill] sm:$0xff] }
  0x51   :  { %v617_v20 = vadd.f32 %v615_v10, %v576_v62  ;;  %1529 = vmatprep.subr.mxu1 %v704_v48  ;;  %v573_v31 = vmul.f32 %v2647_v56, %v2154_v60  ;;  %v158_v3 = vadd.f32 %v156_v63, %v115_v57  ;;  %v238_v10 = vmul.f32 %v2660_v46, %v2243_v6  ;;  %v2277_v34 = vld [vmem:[%s2569_s1 + $0x4] sm:$0x4]  ;;  %v2661_v62 = vld [vmem:[#allocation5_spill] sm:$0xff] }
  0x52   :  { %v411_v8 = vadd.f32 %v409_v18, %v370_v51  ;;  %1530 = vmatpush3.msra.mxu1 %v704_v48  ;;  %v2280_v35 = vrot.slane %v353_v30, %v1635_v16  ;;  %v598_v18 = vld [vmem:[%s2569_s1 + $0x4] sm:$0x8]  ;;  %v30_v60 = vmul.f32 %v1807_v43, %v29_v29  ;;  %v277_v51 = vmul.f32 %v2661_v62, %v2256_v13  ;;  %v715_v16 = vld [vmem:[%s2571_s3 + $0x38] sm:$0xff] }
  0x53   :  { %v658_v58 = vadd.f32 %v656_v12, %v617_v20  ;;  %1506 = vmatmul.mubr.msk.f32.gmra.mxu0 %vm740_vm0, %v713_v40  ;;  %v197_v37 = vadd.f32 %v195_v54, %v158_v3  ;;  %v2290_v57 = vrot.slane %v353_v30, %v1637_v17  ;;  %v2662_v43 = vld [vmem:[#allocation6_spill] sm:$0xff]  ;;  %v2300_v12 = vrot.slane %v435_v39, %v1642_v19  ;;  %v716_v30 = vld [vmem:[%s2571_s3 + $0x40] sm:$0xff] }
  0x54   :  { %v452_v63 = vadd.f32 %v450_v7, %v411_v8  ;;  %1508 = vmatprep.mubr.msk.f32.mxu0 %vm740_vm0, %v714_v32  ;;  %v320_v29 = vmul.f32 %v2662_v43, %v2265_v14  ;;  %v517_v7 = vunpack.c.l.bf16 %v2277_v34  ;;  %v73_v17 = vmul.f32 %v2637_v55, %v2207_v52  ;;  %v2663_v20 = vld [vmem:[#allocation23_spill] sm:$0xff] }
  0x55   :  { %679 = vst.msk [vmem:[#allocation2 + $0x18] sm:$0xff] %vm675_vm1, %v658_v58  ;;  %v240_v54 = vadd.f32 %v238_v10, %v197_v37  ;;  %v599_v40 = vunpack.c.l.bf16 %v598_v18  ;;  %v112_v48 = vmul.f32 %v2651_v4, %v2210_v36  ;;  %v614_v32 = vmul.f32 %v2663_v20, %v2179_v24  ;;  %v2665_v18 = vld [vmem:[#allocation10_spill] sm:$0xff]  ;;  %v1129_v37 = vld [vmem:[%s2573_s4 + $0x10] sm:$0xff] }
  0x56   :  { %v493_v27 = vadd.f32 %v491_v59, %v452_v63  ;;  %v655_v19 = vmul.f32 %v1981_v26, %v2187_v5  ;;  %v359_v8 = vmul.f32 %v2652_v0, %v2280_v35  ;;  %v75_v55 = vadd.f32 %v73_v17, %v30_v60  ;;  %v717_v5 = vld [vmem:[%s2571_s3 + $0x48] sm:$0xff]  ;;  %v2666_v17 = vld [vmem:[#allocation11_spill] sm:$0xff] }
  0x57   :  { %1509 = vmatmul.mubr.msk.f32.gmra.mxu0 %vm740_vm0, %v715_v16  ;;  %v279_v3 = vadd.f32 %v277_v51, %v240_v54  ;;  %v2318_v59 = vrot.slane %v435_v39, %v1649_v21  ;;  %v155_v4 = vmul.f32 %v1852_v1, %v2213_v25  ;;  %v402_v0 = vmul.f32 %v2640_v42, %v2290_v57  ;;  %v718_v21 = vld [vmem:[%s2571_s3 + $0x50] sm:$0xff] }
  0x58   :  { %v534_v52 = vadd.f32 %v532_v11, %v493_v27  ;;  %1511 = vmatprep.mubr.msk.f32.mxu0 %vm740_vm0, %v716_v30  ;;  %v521_v24 = vrot.slane %v517_v7, %v1651_v22  ;;  %v114_v36 = vadd.f32 %v112_v48, %v75_v55  ;;  %v194_v11 = vmul.f32 %v2653_v41, %v2216_v9  ;;  %v2664_v39 = vld [vmem:[#allocation9_spill] sm:$0xff] }
  0x59   :  { %v322_v25 = vadd.f32 %v320_v29, %v279_v3  ;;  %v441_v46 = vmul.f32 %v2664_v39, %v2300_v12  ;;  %v603_v10 = vrot.slane %v599_v40, %v1695_v38  ;;  %v646_v34 = vrot.slane %v599_v40, %v1716_v47  ;;  %v719_v38 = vld [vmem:[%s2571_s3 + $0x58] sm:$0xff] }
  0x5a   :  { %v575_v1 = vadd.f32 %v573_v31, %v534_v52  ;;  %v157_v42 = vadd.f32 %v155_v4, %v114_v36  ;;  %v237_v22 = vmul.f32 %v2642_v28, %v2243_v6  ;;  %v2341_v58 = vmul.f32 %v1946_v61, %v521_v24  ;;  %v720_v6 = vld [vmem:[%s2571_s3 + $0x60] sm:$0xff]  ;;  %v2667_v40 = vld [vmem:[#allocation14_spill] sm:$0xff]  ;;  %v1133_v36 = vld [vmem:[%s2573_s4 + $0x30] sm:$0xff] }
  0x5b   :  { %1512 = vmatmul.mubr.msk.f32.gmra.mxu0 %vm740_vm0, %v717_v5  ;;  %v361_v31 = vadd.f32 %v359_v8, %v322_v25  ;;  %v484_v60 = vmul.f32 %v2665_v18, %v2318_v59  ;;  %v2347_v63 = vmul.f32 %v2663_v20, %v603_v10  ;;  %v276_v61 = vmul.f32 %v1881_v44, %v2256_v13  ;;  %v1127_v44 = vld [vmem:[%s2573_s4] sm:$0xff]  ;;  %v1128_v20 = vld [vmem:[%s2573_s4 + $0x8] sm:$0xff]  ;;  %v723_v8 = vld [vmem:[%s2571_s3 + $0x78] sm:$0xff] }
  0x5c   :  { %v703_v41 = vld [vmem:[#allocation2 + $0x18] sm:$0xff]  ;;  %v616_v9 = vadd.f32 %v614_v32, %v575_v1  ;;  %1514 = vmatprep.mubr.msk.f32.mxu0 %vm740_vm0, %v718_v21  ;;  %v196_v47 = vadd.f32 %v194_v11, %v157_v42  ;;  %v2356_v28 = vmul.f32 %v1981_v26, %v646_v34  ;;  %v564_v16 = vrot.slane %v517_v7, %v1682_v33  ;;  %v721_v33 = vld [vmem:[%s2571_s3 + $0x68] sm:$0xff]  ;;  %v1135_v1 = vld [vmem:[%s2573_s4 + $0x40] sm:$0xff] }
  0x5d   :  { %1531 = vmatprep.subr.mxu1 %v703_v41  ;;  %v404_v51 = vadd.f32 %v402_v0, %v361_v31  ;;  %v1566_v43 = vmov 0   ;;  %v319_v13 = vmul.f32 %v1884_v15, %v2265_v14  ;;  %v523_v30 = vmul.f32 %v2666_v17, %v521_v24  ;;  %v722_v15 = vld [vmem:[%s2571_s3 + $0x70] sm:$0xff]  ;;  %v1130_v14 = vld [vmem:[%s2573_s4 + $0x18] sm:$0xff]  ;;  %v1136_v21 = vld [vmem:[%s2573_s4 + $0x48] sm:$0xff] }
  0x5e   :  { %1532 = vmatpush3.msra.mxu1 %v703_v41  ;;  %v657_v62 = vadd.f32 %v655_v19, %v616_v9  ;;  %1565 = vset.pattern.permute.xlu1 %v1566_v43  ;;  %v239_v26 = vadd.f32 %v237_v22, %v196_v47  ;;  %v358_v27 = vmul.f32 %v2644_v2, %v2280_v35  ;;  %v1140_v42 = vld [vmem:[%s2573_s4 + $0x68] sm:$0xff]  ;;  %v1139_v22 = vld [vmem:[%s2573_s4 + $0x60] sm:$0xff]  ;;  %v1141_v41 = vld [vmem:[%s2573_s4 + $0x70] sm:$0xff] }
  0x5f   :  { %1515 = vmatmul.mubr.msk.f32.gmra.mxu0 %vm740_vm0, %v719_v38  ;;  %1564 = vset.pattern.permute.xlu0 %v1566_v43  ;;  %v443_v29 = vadd.f32 %v441_v46, %v404_v51  ;;  %v566_v48 = vmul.f32 %v2667_v40, %v564_v16  ;;  %v401_v2 = vmul.f32 %v2646_v53, %v2290_v57  ;;  %v1132_v53 = vld [vmem:[%s2573_s4 + $0x28] sm:$0xff]  ;;  %v1137_v46 = vld [vmem:[%s2573_s4 + $0x50] sm:$0xff]  ;;  %v696_v51 = vld [vmem:[%s2572_s2 + $0x60] sm:$0xff] }
  0x60   :  { %678 = vst.msk [vmem:[#allocation2 + $0x10] sm:$0xff] %vm675_vm1, %v657_v62  ;;  %1517 = vmatprep.mubr.msk.f32.mxu0 %vm740_vm0, %v720_v6  ;;  %1155 = vperm.xlu1 %1565, %v1129_v37   ;;  %v278_v7 = vadd.f32 %v276_v61, %v239_v26  ;;  %v605_v19 = vmul.f32 %v2643_v50, %v603_v10  ;;  %v1131_v50 = vld [vmem:[%s2573_s4 + $0x20] sm:$0xff]  ;;  %v685_v31 = vld [vmem:[%s2572_s2 + $0x8] sm:$0xff]  ;;  %v686_v18 = vld [vmem:[%s2572_s2 + $0x10] sm:$0xff] }
  0x61   :  { %1145 = vperm.xlu0 %1564, %v1127_v44   ;;  %v486_v54 = vadd.f32 %v484_v60, %v443_v29  ;;  %v440_v52 = vmul.f32 %v1901_v49, %v2300_v12  ;;  %v648_v3 = vmul.f32 %v2657_v45, %v646_v34  ;;  %v483_v0 = vmul.f32 %v2658_v23, %v2318_v59  ;;  %v1134_v45 = vld [vmem:[%s2573_s4 + $0x38] sm:$0xff]  ;;  %v689_v38 = vld [vmem:[%s2572_s2 + $0x28] sm:$0xff]  ;;  %v690_v47 = vld [vmem:[%s2572_s2 + $0x30] sm:$0xff] }
  0x62   :  { %v321_v32 = vadd.f32 %v319_v13, %v278_v7  ;;  %v565_v23 = vmul.f32 %v2647_v56, %v564_v16  ;;  %v1138_v56 = vld [vmem:[%s2573_s4 + $0x58] sm:$0xff]  ;;  %v693_v6 = vld [vmem:[%s2572_s2 + $0x48] sm:$0xff]  ;;  %v694_v37 = vld [vmem:[%s2572_s2 + $0x50] sm:$0xff] }
  0x63   :  { %1518 = vmatmul.mubr.msk.f32.gmra.mxu0 %vm740_vm0, %v721_v33  ;;  %v525_v35 = vadd.f32 %v523_v30, %v486_v54  ;;  %v687_v60 = vld [vmem:[%s2572_s2 + $0x18] sm:$0xff]  ;;  %v697_v16 = vld [vmem:[%s2572_s2 + $0x68] sm:$0xff]  ;;  %v698_v43 = vld [vmem:[%s2572_s2 + $0x70] sm:$0xff] }
  0x64   :  { %1520 = vmatprep.mubr.msk.f32.mxu0 %vm740_vm0, %v722_v15  ;;  %1160 = vperm.xlu1 %1565, %v1130_v14   ;;  %v360_v55 = vadd.f32 %v358_v27, %v321_v32  ;;  %v691_v61 = vld [vmem:[%s2572_s2 + $0x38] sm:$0xff] }
  0x65   :  { %1150 = vperm.xlu0 %1564, %v1128_v20   ;;  %v568_v57 = vadd.f32 %v566_v48, %v525_v35  ;;  %v695_v62 = vld [vmem:[%s2572_s2 + $0x58] sm:$0xff] }
  0x66   :  { %v403_v5 = vadd.f32 %v401_v2, %v360_v55  ;;  %v699_v44 = vld [vmem:[%s2572_s2 + $0x78] sm:$0xff] }
  0x67   :  { %v702_v4 = vld [vmem:[#allocation2 + $0x10] sm:$0xff]  ;;  %1521 = vmatmul.mubr.msk.f32.gmra.mxu0 %vm740_vm0, %v723_v8  ;;  %v607_v49 = vadd.f32 %v605_v19, %v568_v57 }
  0x68   :  { %1533 = vmatprep.subr.mxu1 %v702_v4  ;;  %1170 = vperm.xlu1 %1565, %v1132_v53   ;;  %v442_v12 = vadd.f32 %v440_v52, %v403_v5 }
  0x69   :  { %1534 = vmatpush3.msra.mxu1 %v702_v4  ;;  %1165 = vperm.xlu0 %1564, %v1131_v50   ;;  %v650_v24 = vadd.f32 %v648_v3, %v607_v49 }
  0x6a   :  { %v485_v11 = vadd.f32 %v483_v0, %v442_v12 }
  0x6b   :  { %677 = vst.msk [vmem:[#allocation2 + $0x8] sm:$0xff] %vm675_vm1, %v650_v24 }
  0x6c   :  { %1180 = vperm.xlu1 %1565, %v1134_v45   ;;  %v524_v59 = vadd.f32 %v2341_v58, %v485_v11  ;;  %v1142_v58 = vld [vmem:[%s2573_s4 + $0x78] sm:$0xff] }
  0x6d   :  { %1175 = vperm.xlu0 %1564, %v1133_v36  }
  0x6e   :  { %v567_v25 = vadd.f32 %v565_v23, %v524_v59 }
  0x70   :  { %1190 = vperm.xlu1 %1565, %v1136_v21   ;;  %v606_v39 = vadd.f32 %v2347_v63, %v567_v25  ;;  %v688_v63 = vld [vmem:[%s2572_s2 + $0x20] sm:$0xff] }
  0x71   :  { %1185 = vperm.xlu0 %1564, %v1135_v1  }
  0x72   :  { %v701_v10 = vld [vmem:[#allocation2 + $0x8] sm:$0xff]  ;;  %v649_v34 = vadd.f32 %v2356_v28, %v606_v39  ;;  %v692_v28 = vld [vmem:[%s2572_s2 + $0x40] sm:$0xff] }
  0x73   :  { %1535 = vmatprep.subr.mxu1 %v701_v10 }
  0x74   :  { %1200 = vperm.xlu1 %1565, %v1138_v56   ;;  %1536 = vmatpush3.msra.mxu1 %v701_v10  ;;  %676 = vst.msk [vmem:[#allocation2] sm:$0xff] %vm675_vm1, %v649_v34 }
  0x75   :  { %1195 = vperm.xlu0 %1564, %v1137_v46  }
  0x78   :  { %1210 = vperm.xlu1 %1565, %v1140_v42  }
  0x79   :  { %1205 = vperm.xlu0 %1564, %v1139_v22  }
  0x7b   :  { %v700_v9 = vld [vmem:[#allocation2] sm:$0xff] }
  0x7c   :  { %1220 = vperm.xlu1 %1565, %v1142_v58   ;;  %1537 = vmatprep.subr.mxu1 %v700_v9 }
  0x7d   :  { %1215 = vperm.xlu0 %1564, %v1141_v41   ;;  %1538 = vmatpush3.msra.mxu1 %v700_v9 }
  0x7e   :  { %1540 = vmatmul.mubr.msk.f32.vlgmr.msra.gmra.mxu1 %vm740_vm0, %v685_v31 }
  0x7f   :  { %1542 = vmatprep.mubr.msk.f32.mxu1 %vm740_vm0, %v686_v18 }
  0x82   :  { %1543 = vmatmul.mubr.msk.f32.gmra.mxu1 %vm740_vm0, %v687_v60 }
  0x83   :  { %1545 = vmatprep.mubr.msk.f32.mxu1 %vm740_vm0, %v688_v63 }
  0x86   :  { %1546 = vmatmul.mubr.msk.f32.gmra.mxu1 %vm740_vm0, %v689_v38 }
  0x87   :  { %1548 = vmatprep.mubr.msk.f32.mxu1 %vm740_vm0, %v690_v47 }
  0x8a   :  { %1549 = vmatmul.mubr.msk.f32.gmra.mxu1 %vm740_vm0, %v691_v61 }
  0x8b   :  { %1551 = vmatprep.mubr.msk.f32.mxu1 %vm740_vm0, %v692_v28 }
  0x8e   :  { %1552 = vmatmul.mubr.msk.f32.gmra.mxu1 %vm740_vm0, %v693_v6 }
  0x8f   :  { %1554 = vmatprep.mubr.msk.f32.mxu1 %vm740_vm0, %v694_v37 }
  0x92   :  { %1555 = vmatmul.mubr.msk.f32.gmra.mxu1 %vm740_vm0, %v695_v62 }
  0x93   :  { %1557 = vmatprep.mubr.msk.f32.mxu1 %vm740_vm0, %v696_v51 }
  0x96   :  { %1558 = vmatmul.mubr.msk.f32.gmra.mxu1 %vm740_vm0, %v697_v16 }
  0x97   :  { %1560 = vmatprep.mubr.msk.f32.mxu1 %vm740_vm0, %v698_v43 }
  0x9a   :  { %1561 = vmatmul.mubr.msk.f32.gmra.mxu1 %vm740_vm0, %v699_v44 }
  0xdb   :  { %v1156_v33 = vpop.permute.xlu1 %1155 }
  0xdc   :  { %v1146_v7 = vpop.permute.xlu0 %1145 }
  0xdf   :  { %v1161_v15 = vpop.permute.xlu1 %1160 }
  0xe0   :  { %v1151_v54 = vpop.permute.xlu0 %1150 }
  0xe3   :  { %v1171_v48 = vpop.permute.xlu1 %1170 }
  0xe4   :  { %v1166_v32 = vpop.permute.xlu0 %1165 }
  0xe7   :  { %v1181_v53 = vpop.permute.xlu1 %1180 }
  0xe8   :  { %v1176_v0 = vpop.permute.xlu0 %1175 }
  0xeb   :  { %v1191_v1 = vpop.permute.xlu1 %1190 }
  0xec   :  { %v1186_v10 = vpop.permute.xlu0 %1185 }
  0xef   :  { %v1201_v63 = vpop.permute.xlu1 %1200 }
  0xf0   :  { %v1196_v37 = vpop.permute.xlu0 %1195 }
 0x10b   :  { %v1501_v26 = vpop.f32.mrf.mxu0 }
 0x10d   :  { %v855_v13 = vpop.f32.mrf.mxu0 }
 0x10f   :  { %v1504_v29 = vpop.f32.mrf.mxu0 }
 0x111   :  { %v865_v17 = vpop.f32.mrf.mxu0 }
 0x113   :  { %v1507_v30 = vpop.f32.mrf.mxu0 }
 0x115   :  { %v875_v27 = vpop.f32.mrf.mxu0 }
 0x117   :  { %v1510_v14 = vpop.f32.mrf.mxu0 }
 0x119   :  { %v885_v40 = vpop.f32.mrf.mxu0 }
 0x11b   :  { %v1513_v19 = vpop.f32.mrf.mxu0 }
 0x11d   :  { %v895_v5 = vpop.f32.mrf.mxu0 }
 0x11f   :  { %v1516_v21 = vpop.f32.mrf.mxu0 }
 0x121   :  { %v905_v41 = vpop.f32.mrf.mxu0 }
 0x123   :  { %v1519_v6 = vpop.f32.mrf.mxu0 }
 0x13e   :  { %v1541_v20 = vpop.f32.mrf.mxu1 }
 0x13f   :  { %v1054_v2 = vadd.f32 %v1541_v20, %v1501_v26 }
 0x140   :  { %v1048_v35 = vpop.f32.mrf.mxu1 }
 0x141   :  { %v1224_v8 = vadd.f32 %v1151_v54, %v1054_v2  ;;  %v1049_v55 = vadd.f32 %v1048_v35, %v855_v13 }
 0x142   :  { %v1544_v52 = vpop.f32.mrf.mxu1 }
 0x143   :  { %v1240_v57 = vmax.f32 %v1224_v8, 0.0  ;;  %v1223_v3 = vadd.f32 %v1146_v7, %v1049_v55  ;;  %v1064_v50 = vadd.f32 %v1544_v52, %v1504_v29 }
 0x144   :  { %v1058_v4 = vpop.f32.mrf.mxu1 }
 0x145   :  { %1256 = vst.msk [vmem:[%s2574_s5 + $0x8] sm:$0xff] %vm675_vm1, %v1240_v57  ;;  %v1239_v49 = vmax.f32 %v1223_v3, 0.0  ;;  %v1226_v12 = vadd.f32 %v1161_v15, %v1064_v50  ;;  %v1059_v45 = vadd.f32 %v1058_v4, %v865_v17  ;;  %v915_v17 = vpop.f32.mrf.mxu0 }
 0x146   :  { %v1547_v24 = vpop.f32.mrf.mxu1 }
 0x147   :  { %1255 = vst.msk [vmem:[%s2574_s5] sm:$0xff] %vm675_vm1, %v1239_v49  ;;  %v1242_v36 = vmax.f32 %v1226_v12, 0.0  ;;  %v1225_v11 = vadd.f32 %v1156_v33, %v1059_v45  ;;  %v1074_v23 = vadd.f32 %v1547_v24, %v1507_v30  ;;  %v1211_v30 = vpop.permute.xlu1 %1210  ;;  %v1522_v20 = vpop.f32.mrf.mxu0 }
 0x148   :  { %v1068_v59 = vpop.f32.mrf.mxu1 }
 0x149   :  { %1258 = vst.msk [vmem:[%s2574_s5 + $0x18] sm:$0xff] %vm675_vm1, %v1242_v36  ;;  %v1241_v25 = vmax.f32 %v1225_v11, 0.0  ;;  %v1228_v39 = vadd.f32 %v1171_v48, %v1074_v23  ;;  %v1069_v56 = vadd.f32 %v1068_v59, %v875_v27  ;;  %v925_v3 = vpop.f32.mrf.mxu0 }
 0x14a   :  { %v1550_v46 = vpop.f32.mrf.mxu1 }
 0x14b   :  { %1257 = vst.msk [vmem:[%s2574_s5 + $0x10] sm:$0xff] %vm675_vm1, %v1241_v25  ;;  %v1244_v34 = vmax.f32 %v1228_v39, 0.0  ;;  %v1227_v42 = vadd.f32 %v1166_v32, %v1069_v56  ;;  %v1084_v22 = vadd.f32 %v1550_v46, %v1510_v14  ;;  %v1206_v14 = vpop.permute.xlu0 %1205  ;;  %v1221_v55 = vpop.permute.xlu1 %1220 }
 0x14c   :  { %v1078_v58 = vpop.f32.mrf.mxu1 }
 0x14d   :  { %1260 = vst.msk [vmem:[%s2574_s5 + $0x28] sm:$0xff] %vm675_vm1, %v1244_v34  ;;  %v1243_v9 = vmax.f32 %v1227_v42, 0.0  ;;  %v1230_v31 = vadd.f32 %v1181_v53, %v1084_v22  ;;  %v1079_v18 = vadd.f32 %v1078_v58, %v885_v40 }
 0x14e   :  { %v1553_v60 = vpop.f32.mrf.mxu1 }
 0x14f   :  { %1259 = vst.msk [vmem:[%s2574_s5 + $0x20] sm:$0xff] %vm675_vm1, %v1243_v9  ;;  %v1246_v38 = vmax.f32 %v1230_v31, 0.0  ;;  %v1229_v47 = vadd.f32 %v1176_v0, %v1079_v18  ;;  %v1094_v61 = vadd.f32 %v1553_v60, %v1513_v19  ;;  %v1216_v49 = vpop.permute.xlu0 %1215 }
 0x150   :  { %v1088_v28 = vpop.f32.mrf.mxu1 }
 0x151   :  { %1262 = vst.msk [vmem:[%s2574_s5 + $0x38] sm:$0xff] %vm675_vm1, %v1246_v38  ;;  %v1245_v62 = vmax.f32 %v1229_v47, 0.0  ;;  %v1232_v51 = vadd.f32 %v1191_v1, %v1094_v61  ;;  %v1089_v16 = vadd.f32 %v1088_v28, %v895_v5 }
 0x152   :  { %v1556_v43 = vpop.f32.mrf.mxu1 }
 0x153   :  { %1261 = vst.msk [vmem:[%s2574_s5 + $0x30] sm:$0xff] %vm675_vm1, %v1245_v62  ;;  %v1248_v44 = vmax.f32 %v1232_v51, 0.0  ;;  %v1231_v26 = vadd.f32 %v1186_v10, %v1089_v16  ;;  %v1104_v13 = vadd.f32 %v1556_v43, %v1516_v21 }
 0x154   :  { %v1098_v29 = vpop.f32.mrf.mxu1 }
 0x155   :  { %1264 = vst.msk [vmem:[%s2574_s5 + $0x48] sm:$0xff] %vm675_vm1, %v1248_v44  ;;  %v1247_v33 = vmax.f32 %v1231_v26, 0.0  ;;  %v1234_v7 = vadd.f32 %v1201_v63, %v1104_v13  ;;  %v1099_v27 = vadd.f32 %v1098_v29, %v905_v41 }
 0x156   :  { %v1559_v15 = vpop.f32.mrf.mxu1 }
 0x157   :  { %1263 = vst.msk [vmem:[%s2574_s5 + $0x40] sm:$0xff] %vm675_vm1, %v1247_v33  ;;  %v1250_v54 = vmax.f32 %v1234_v7, 0.0  ;;  %v1233_v40 = vadd.f32 %v1196_v37, %v1099_v27  ;;  %v1114_v48 = vadd.f32 %v1559_v15, %v1519_v6 }
 0x158   :  { %v1108_v32 = vpop.f32.mrf.mxu1 }
 0x159   :  { %1266 = vst.msk [vmem:[%s2574_s5 + $0x58] sm:$0xff] %vm675_vm1, %v1250_v54  ;;  %v1249_v2 = vmax.f32 %v1233_v40, 0.0  ;;  %v1236_v35 = vadd.f32 %v1211_v30, %v1114_v48  ;;  %v1109_v19 = vadd.f32 %v1108_v32, %v915_v17 }
 0x15a   :  { %v1562_v8 = vpop.f32.mrf.mxu1 }
 0x15b   :  { %1265 = vst.msk [vmem:[%s2574_s5 + $0x50] sm:$0xff] %vm675_vm1, %v1249_v2  ;;  %v1252_v52 = vmax.f32 %v1236_v35, 0.0  ;;  %v1235_v53 = vadd.f32 %v1206_v14, %v1109_v19  ;;  %v1124_v57 = vadd.f32 %v1562_v8, %v1522_v20 }
 0x15c   :  { %v1118_v50 = vpop.f32.mrf.mxu1 }
 0x15d   :  { %1268 = vst.msk [vmem:[%s2574_s5 + $0x68] sm:$0xff] %vm675_vm1, %v1252_v52  ;;  %v1251_v4 = vmax.f32 %v1235_v53, 0.0  ;;  %v1238_v5 = vadd.f32 %v1221_v55, %v1124_v57  ;;  %v1119_v0 = vadd.f32 %v1118_v50, %v925_v3 }
 0x15f   :  { %1267 = vst.msk [vmem:[%s2574_s5 + $0x60] sm:$0xff] %vm675_vm1, %v1251_v4  ;;  %v1254_v12 = vmax.f32 %v1238_v5, 0.0  ;;  %v1237_v45 = vadd.f32 %v1216_v49, %v1119_v0 }
 0x161   :  { %1270 = vst.msk [vmem:[%s2574_s5 + $0x78] sm:$0xff] %vm675_vm1, %v1254_v12  ;;  %v1253_v24 = vmax.f32 %v1237_v45, 0.0 }
 0x163   :  { %1269 = vst.msk [vmem:[%s2574_s5 + $0x70] sm:$0xff] %vm675_vm1, %v1253_v24 }

</bundles_post_ra>
